<compile_context>
chip_gen: v5e
topology: v5e:2x2
jax: 0.10.0
libtpu: 0.0.40
codegen_flags: <defaults>
</compile_context>

<pallas_src>
from functools import partial

import numpy as np
import jax
import jax.numpy as jnp
from jax import lax
from jax.experimental import pallas as pl
from jax.experimental.pallas import tpu as pltpu


# ------------------------------------------------------------------ genotype
PRIMITIVES = ['none', 'max_pool_3x3', 'avg_pool_3x3', 'skip_connect',
              'sep_conv_3x3', 'sep_conv_5x5', 'dil_conv_3x3', 'dil_conv_5x5']

GENOTYPE = [
    {'ops': [3, 1], 'inputs': [0, 1]},   # skip_connect , max_pool_3x3
    {'ops': [2, 3], 'inputs': [0, 2]},   # avg_pool_3x3 , skip_connect
    {'ops': [1, 2], 'inputs': [1, 3]},   # max_pool_3x3 , avg_pool_3x3
    {'ops': [3, 1], 'inputs': [2, 4]},   # skip_connect , max_pool_3x3
]
CONCAT = [2, 3, 4, 5]                    # multiplier = 4


# ------------------------------------------------------------ fused cell kernel
def _cell_kernel(geom_ref, s0_ref, s1_ref, w0_ref, b0_ref, w1_ref, b1_ref,
                 out_ref, *, height, width, nb, c):
    """One grid step == `nb` images, stacked image-major on the sublane axis.

    geom_ref : (16, H*W)            static pooling geometry (host precomputed)
                 row 0      : 1 / count_include_pad=False divisor
                 rows 1..4  : 0/1 masks  (tap at w-1, w+1, h-1, h+1 in-image)
                 rows 5..8  : 0/-inf penalties for the same four taps
    s0_ref   : (nb*Cin0, H*W)       preprocess0 input block
    s1_ref   : (nb*Cin1, H*W)       preprocess1 input block
    w*_ref   : (nb*C, nb*Cin)       block-diagonal 1x1 conv weight (BN folded)
    b*_ref   : (nb*C, 1)            folded BN bias (tiled per image)
    out_ref  : (nb*4*C, H*W)        channel-concatenated cell output
    """
    hw = height * width

    inv_cnt = geom_ref[0:1, :]
    fm_l, fm_r = geom_ref[1:2, :], geom_ref[2:3, :]
    fm_u, fm_d = geom_ref[3:4, :], geom_ref[4:5, :]
    pen_l, pen_r = geom_ref[5:6, :], geom_ref[6:7, :]
    pen_u, pen_d = geom_ref[7:8, :], geom_ref[8:9, :]

    # Taps via lane rotation (wrap-around lanes are always masked out below).
    def tap_wm1(x):   # value from (h, w-1)
        return pltpu.roll(x, shift=1, axis=1)

    def tap_wp1(x):   # value from (h, w+1)
        return pltpu.roll(x, shift=hw - 1, axis=1)

    def tap_hm1(x):   # value from (h-1, w)
        return pltpu.roll(x, shift=width, axis=1)

    def tap_hp1(x):   # value from (h+1, w)
        return pltpu.roll(x, shift=hw - width, axis=1)

    def max_pool_3x3(x):                 # nn.MaxPool2d(3, 1, 1), separable
        # 0/-inf penalties: invalid taps become -inf; centre tap always valid.
        hmax = jnp.maximum(x, jnp.maximum(tap_wm1(x) + pen_l,
                                          tap_wp1(x) + pen_r))
        return jnp.maximum(hmax, jnp.maximum(tap_hm1(hmax) + pen_u,
                                             tap_hp1(hmax) + pen_d))

    def avg_pool_3x3(x):   # nn.AvgPool2d(3, 1, 1, count_include_pad=False)
        hsum = x + tap_wm1(x) * fm_l + tap_wp1(x) * fm_r
        vsum = hsum + tap_hm1(hsum) * fm_u + tap_hp1(hsum) * fm_d
        return vsum * inv_cnt

    def relu_conv_bn(x_ref, w_ref, b_ref):
        # ReLU -> 1x1 conv -> folded BN as one MXU matmul; the block-diagonal
        # weight handles all nb images of the sublane-stacked block at once.
        xr = jnp.maximum(x_ref[...], 0.0)
        y = jnp.dot(w_ref[...], xr, preferred_element_type=jnp.float32,
                    precision=lax.Precision.HIGHEST)
        return y + b_ref[...]                       # (nb*C, 1) lane-broadcast

    memo = {}

    def apply_primitive(op_idx, state_idx, states):
        name = PRIMITIVES[op_idx]
        if name == 'skip_connect':       # stride 1 (non-reduction) => Identity
            return states[state_idx]
        if name not in ('max_pool_3x3', 'avg_pool_3x3'):
            # TODO(synk): sep_conv / dil_conv primitives not used by this genotype.
            raise NotImplementedError(name)
        key = (op_idx, state_idx)
        if key not in memo:              # dedup: max_pool_3x3(s1) reused twice
            fn = max_pool_3x3 if name == 'max_pool_3x3' else avg_pool_3x3
            memo[key] = fn(states[state_idx])
        return memo[key]

    def write_state(concat_pos, st):
        # Channel concat: lane-dense (C, H*W) slabs written per image, as soon
        # as the state value is final (shrinks live ranges).
        for img in range(nb):
            dst = img * len(CONCAT) * c + concat_pos * c
            out_ref[dst:dst + c, :] = st[img * c:(img + 1) * c, :]

    # ---- cell body (eval mode: drop_path is a no-op) ------------------------
    s0 = relu_conv_bn(s0_ref, w0_ref, b0_ref)   # preprocess0
    s1 = relu_conv_bn(s1_ref, w1_ref, b1_ref)   # preprocess1
    states = [s0, s1]
    for step in GENOTYPE:
        i0, i1 = step['inputs']
        o0, o1 = step['ops']
        new_state = (apply_primitive(o0, i0, states) +
                     apply_primitive(o1, i1, states))
        states.append(new_state)
        new_idx = len(states) - 1
        if new_idx in CONCAT:
            write_state(CONCAT.index(new_idx), new_state)


# ------------------------------------------------------------------- wrapper
def _pick_images_per_step(n, max_images=4):
    # Batch images per grid step (amortises step overhead on single-TC
    # v5e/v6e) while keeping >= 2 grid steps so both v7x TensorCores get work.
    for nb in range(min(max_images, n), 0, -1):
        if n % nb == 0 and n // nb >= 2:
            return nb
    return 1


def _pool_geometry(h, w):
    """Host-side (numpy) constants for 3x3 / stride-1 / pad-1 pooling."""
    hw = h * w
    pos = np.arange(hw)
    wp, hp = pos % w, pos // w
    ok_l = (wp >= 1).astype(np.float32)
    ok_r = (wp <= w - 2).astype(np.float32)
    ok_u = (hp >= 1).astype(np.float32)
    ok_d = (hp <= h - 2).astype(np.float32)
    cnt = (1.0 + ok_l + ok_r) * (1.0 + ok_u + ok_d)   # 4 / 6 / 9
    geom = np.zeros((16, hw), np.float32)
    geom[0] = 1.0 / cnt
    geom[1], geom[2], geom[3], geom[4] = ok_l, ok_r, ok_u, ok_d
    for row, ok in zip((5, 6, 7, 8), (ok_l, ok_r, ok_u, ok_d)):
        geom[row] = np.where(ok > 0, 0.0, -np.inf)
    return jnp.asarray(geom)


def factorized_cell_forward(s0_nchw, s1_nchw, params, drop_prob=0.0,
                            images_per_step=None):
    """Eval-mode FactorizedCell forward; inputs and output are NCHW."""
    del drop_prob                              # eval mode: drop_path is a no-op
    n, c_pp, h, w = s0_nchw.shape
    _, c_p, h1, w1 = s1_nchw.shape
    assert (h1, w1) == (h, w)
    w0, b0 = params['pre0']
    w1_, b1 = params['pre1']
    c = w0.shape[0]
    c_out = c * len(CONCAT)
    hw = h * w
    assert hw % 128 == 0 and c % 8 == 0 and c_pp % 8 == 0 and c_p % 8 == 0

    nb = images_per_step or _pick_images_per_step(n)
    assert n % nb == 0
    g = n // nb

    # Block-diagonal preprocess weights: one MXU matmul covers all nb images
    # of the image-major (nb*Cin, H*W) block. Biases tiled to match.
    eye = jnp.eye(nb, dtype=jnp.float32)
    w0_bd = jnp.kron(eye, w0)                          # (nb*C, nb*C_pp)
    w1_bd = jnp.kron(eye, w1_)                         # (nb*C, nb*C_p)
    b0_bd = jnp.tile(b0, nb).reshape(nb * c, 1)
    b1_bd = jnp.tile(b1, nb).reshape(nb * c, 1)

    geom = _pool_geometry(h, w)                        # (16, H*W), resident

    kernel = partial(_cell_kernel, height=h, width=w, nb=nb, c=c)
    out = pl.pallas_call(
        kernel,
        out_shape=jax.ShapeDtypeStruct((g, nb * c_out, hw), jnp.float32),
        grid=(g,),
        in_specs=[
            pl.BlockSpec((16, hw), lambda i: (0, 0)),                  # geom
            pl.BlockSpec((None, nb * c_pp, hw), lambda i: (i, 0, 0)),  # s0
            pl.BlockSpec((None, nb * c_p, hw), lambda i: (i, 0, 0)),   # s1
            pl.BlockSpec((nb * c, nb * c_pp), lambda i: (0, 0)),       # w0 bd
            pl.BlockSpec((nb * c, 1), lambda i: (0, 0)),               # b0
            pl.BlockSpec((nb * c, nb * c_p), lambda i: (0, 0)),        # w1 bd
            pl.BlockSpec((nb * c, 1), lambda i: (0, 0)),               # b1
        ],
        out_specs=pl.BlockSpec((None, nb * c_out, hw), lambda i: (i, 0, 0)),
        compiler_params=pltpu.CompilerParams(
            dimension_semantics=("parallel",)),   # both TensorCores on v7x
    )(geom,
      s0_nchw.reshape(g, nb * c_pp, hw),          # pure reshapes, no transpose
      s1_nchw.reshape(g, nb * c_p, hw),
      w0_bd, b0_bd, w1_bd, b1_bd)
    return out.reshape(n, c_out, h, w)


# -------------------------------------------------------------------- params
def make_relu_conv_bn_params(key, c_in, c_out, eps=1e-5):
    """Deterministic init of Conv2d(1x1, bias=False) + BatchNorm2d(affine),
    eval mode -> BN folded into the conv: returns (w (Cout,Cin), b (Cout,))."""
    k1, k2, k3, k4, k5 = jax.random.split(key, 5)
    conv_w = jax.random.normal(k1, (c_out, c_in, 1, 1), jnp.float32) * 0.1
    gamma = jax.random.uniform(k2, (c_out,), jnp.float32, 0.5, 1.5)
    beta = jax.random.normal(k3, (c_out,), jnp.float32) * 0.1
    r_mean = jax.random.normal(k4, (c_out,), jnp.float32) * 0.1
    r_var = jax.random.uniform(k5, (c_out,), jnp.float32, 0.5, 1.5)
    scale = gamma / jnp.sqrt(r_var + eps)
    w_folded = conv_w[:, :, 0, 0] * scale[:, None]      # (Cout, Cin)
    b_folded = beta - r_mean * scale                    # (Cout,)
    return w_folded, b_folded


# ----------------------------------------------------------------- reference
def _ref_forward(s0_nchw, s1_nchw, params):
    def rcb(x, w, b):
        y = jnp.einsum('nchw,dc->ndhw', jnp.maximum(x, 0.0), w,
                       precision=lax.Precision.HIGHEST)
        return y + b[None, :, None, None]

    def maxp(x):
        return lax.reduce_window(x, -jnp.inf, lax.max, (1, 1, 3, 3),
                                 (1, 1, 1, 1),
                                 [(0, 0), (0, 0), (1, 1), (1, 1)])

    def avgp(x):
        s = lax.reduce_window(x, 0.0, lax.add, (1, 1, 3, 3), (1, 1, 1, 1),
                              [(0, 0), (0, 0), (1, 1), (1, 1)])
        cnt = lax.reduce_window(jnp.ones_like(x), 0.0, lax.add, (1, 1, 3, 3),
                                (1, 1, 1, 1),
                                [(0, 0), (0, 0), (1, 1), (1, 1)])
        return s / cnt

    def prim(op_idx, x):
        return {'skip_connect': lambda v: v,
                'max_pool_3x3': maxp,
                'avg_pool_3x3': avgp}[PRIMITIVES[op_idx]](x)

    s0 = rcb(s0_nchw, *params['pre0'])
    s1 = rcb(s1_nchw, *params['pre1'])
    states = [s0, s1]
    for step in GENOTYPE:
        i0, i1 = step['inputs']
        o0, o1 = step['ops']
        states.append(prim(o0, states[i0]) + prim(o1, states[i1]))
    return jnp.concatenate([states[i] for i in CONCAT], axis=1)


# --------------------------------------------------------------------- main
if __name__ == "__main__":
    # TODO(synk): only the core FactorizedCell is kernelized; the ImageNet
    # stems, auxiliary head and final classifier of NetworkImageNet stay in XLA.
    N, C_prev_prev, C_prev, C, H, W = 8, 8, 8, 8, 16, 16

    key = jax.random.PRNGKey(0)
    k_s0, k_s1, k_p0, k_p1 = jax.random.split(key, 4)
    s0 = jax.random.normal(k_s0, (N, C_prev_prev, H, W), jnp.float32)   # NCHW
    s1 = jax.random.normal(k_s1, (N, C_prev, H, W), jnp.float32)        # NCHW

    params = {
        'pre0': make_relu_conv_bn_params(k_p0, C_prev_prev, C),
        'pre1': make_relu_conv_bn_params(k_p1, C_prev, C),
    }

    out = jax.block_until_ready(factorized_cell_forward(s0, s1, params))

    expected_shape = (N, C * len(CONCAT), H, W)
    assert out.shape == expected_shape, (out.shape, expected_shape)

    ref = jax.block_until_ready(_ref_forward(s0, s1, params))
    assert jnp.allclose(out, ref, atol=1e-4, rtol=1e-4), \
        float(jnp.max(jnp.abs(out - ref)))

    print("KERNEL_OK")
</pallas_src>

<mosaic_0001>
module attributes {stable_mosaic.version = 11 : i64} {
  func.func @_cell_kernel(%arg0: i32, %arg1: memref<16x256xf32, #tpu.memory_space<vmem>>, %arg2: memref<1x32x256xf32, #tpu.memory_space<vmem>>, %arg3: memref<1x32x256xf32, #tpu.memory_space<vmem>>, %arg4: memref<32x32xf32, #tpu.memory_space<vmem>>, %arg5: memref<32x1xf32, #tpu.memory_space<vmem>>, %arg6: memref<32x32xf32, #tpu.memory_space<vmem>>, %arg7: memref<32x1xf32, #tpu.memory_space<vmem>>, %arg8: memref<1x128x256xf32, #tpu.memory_space<vmem>>) attributes {dimension_semantics = [#tpu.dimension_semantics<parallel>], iteration_bounds = array<i64: 2>, scalar_prefetch = 0 : i64, scratch_operands = 0 : i64, tpu.core_type = #tpu.core_type<tc>, window_params = [{pipeline_mode = #tpu.pipeline_mode<synchronous>, transform_indices = @transform_0, window_bounds = array<i64: 16, 256>}, {transform_indices = @transform_1, window_bounds = array<i64: 1, 32, 256>}, {transform_indices = @transform_2, window_bounds = array<i64: 1, 32, 256>}, {pipeline_mode = #tpu.pipeline_mode<synchronous>, transform_indices = @transform_3, window_bounds = array<i64: 32, 32>}, {pipeline_mode = #tpu.pipeline_mode<synchronous>, transform_indices = @transform_4, window_bounds = array<i64: 32, 1>}, {pipeline_mode = #tpu.pipeline_mode<synchronous>, transform_indices = @transform_5, window_bounds = array<i64: 32, 32>}, {pipeline_mode = #tpu.pipeline_mode<synchronous>, transform_indices = @transform_6, window_bounds = array<i64: 32, 1>}, {transform_indices = @transform_7, window_bounds = array<i64: 1, 128, 256>}]} {
    %c0 = arith.constant 0 : index
    %c0_0 = arith.constant 0 : index
    %0 = vector.load %arg1[%c0, %c0_0] : memref<16x256xf32, #tpu.memory_space<vmem>>, vector<1x256xf32>
    %c1 = arith.constant 1 : index
    %c0_1 = arith.constant 0 : index
    %1 = vector.load %arg1[%c1, %c0_1] : memref<16x256xf32, #tpu.memory_space<vmem>>, vector<1x256xf32>
    %c2 = arith.constant 2 : index
    %c0_2 = arith.constant 0 : index
    %2 = vector.load %arg1[%c2, %c0_2] : memref<16x256xf32, #tpu.memory_space<vmem>>, vector<1x256xf32>
    %c3 = arith.constant 3 : index
    %c0_3 = arith.constant 0 : index
    %3 = vector.load %arg1[%c3, %c0_3] : memref<16x256xf32, #tpu.memory_space<vmem>>, vector<1x256xf32>
    %c4 = arith.constant 4 : index
    %c0_4 = arith.constant 0 : index
    %4 = vector.load %arg1[%c4, %c0_4] : memref<16x256xf32, #tpu.memory_space<vmem>>, vector<1x256xf32>
    %c5 = arith.constant 5 : index
    %c0_5 = arith.constant 0 : index
    %5 = vector.load %arg1[%c5, %c0_5] : memref<16x256xf32, #tpu.memory_space<vmem>>, vector<1x256xf32>
    %c6 = arith.constant 6 : index
    %c0_6 = arith.constant 0 : index
    %6 = vector.load %arg1[%c6, %c0_6] : memref<16x256xf32, #tpu.memory_space<vmem>>, vector<1x256xf32>
    %c7 = arith.constant 7 : index
    %c0_7 = arith.constant 0 : index
    %7 = vector.load %arg1[%c7, %c0_7] : memref<16x256xf32, #tpu.memory_space<vmem>>, vector<1x256xf32>
    %c8 = arith.constant 8 : index
    %c0_8 = arith.constant 0 : index
    %8 = vector.load %arg1[%c8, %c0_8] : memref<16x256xf32, #tpu.memory_space<vmem>>, vector<1x256xf32>
    %c0_9 = arith.constant 0 : index
    %c0_10 = arith.constant 0 : index
    %c0_11 = arith.constant 0 : index
    %9 = vector.load %arg2[%c0_9, %c0_10, %c0_11] : memref<1x32x256xf32, #tpu.memory_space<vmem>>, vector<1x32x256xf32>
    %10 = vector.shape_cast %9 : vector<1x32x256xf32> to vector<32x256xf32>
    %cst = arith.constant 0.000000e+00 : f32
    %11 = vector.broadcast %cst : f32 to vector<32x256xf32>
    %12 = arith.maximumf %10, %11 : vector<32x256xf32>
    %c0_12 = arith.constant 0 : index
    %c0_13 = arith.constant 0 : index
    %13 = vector.load %arg4[%c0_12, %c0_13] : memref<32x32xf32, #tpu.memory_space<vmem>>, vector<32x32xf32>
    %cst_14 = arith.constant dense<0.000000e+00> : vector<32x256xf32>
    %14 = tpu.matmul %13, %12, %cst_14 {dimension_numbers = #tpu.dot_dimension_numbers<[1], [0], [0], [1], [0, 0, 1, 1], [], []>, precision = #tpu.contract_precision<fp32>} : vector<32x32xf32>, vector<32x256xf32>, vector<32x256xf32> -> vector<32x256xf32>
    %c0_15 = arith.constant 0 : index
    %c0_16 = arith.constant 0 : index
    %15 = vector.load %arg5[%c0_15, %c0_16] : memref<32x1xf32, #tpu.memory_space<vmem>>, vector<32x1xf32>
    %16 = vector.broadcast %15 : vector<32x1xf32> to vector<32x256xf32>
    %17 = arith.addf %14, %16 : vector<32x256xf32>
    %c0_17 = arith.constant 0 : index
    %c0_18 = arith.constant 0 : index
    %c0_19 = arith.constant 0 : index
    %18 = vector.load %arg3[%c0_17, %c0_18, %c0_19] : memref<1x32x256xf32, #tpu.memory_space<vmem>>, vector<1x32x256xf32>
    %19 = vector.shape_cast %18 : vector<1x32x256xf32> to vector<32x256xf32>
    %cst_20 = arith.constant 0.000000e+00 : f32
    %20 = vector.broadcast %cst_20 : f32 to vector<32x256xf32>
    %21 = arith.maximumf %19, %20 : vector<32x256xf32>
    %c0_21 = arith.constant 0 : index
    %c0_22 = arith.constant 0 : index
    %22 = vector.load %arg6[%c0_21, %c0_22] : memref<32x32xf32, #tpu.memory_space<vmem>>, vector<32x32xf32>
    %cst_23 = arith.constant dense<0.000000e+00> : vector<32x256xf32>
    %23 = tpu.matmul %22, %21, %cst_23 {dimension_numbers = #tpu.dot_dimension_numbers<[1], [0], [0], [1], [0, 0, 1, 1], [], []>, precision = #tpu.contract_precision<fp32>} : vector<32x32xf32>, vector<32x256xf32>, vector<32x256xf32> -> vector<32x256xf32>
    %c0_24 = arith.constant 0 : index
    %c0_25 = arith.constant 0 : index
    %24 = vector.load %arg7[%c0_24, %c0_25] : memref<32x1xf32, #tpu.memory_space<vmem>>, vector<32x1xf32>
    %25 = vector.broadcast %24 : vector<32x1xf32> to vector<32x256xf32>
    %26 = arith.addf %23, %25 : vector<32x256xf32>
    %c1_i32 = arith.constant 1 : i32
    %27 = tpu.dynamic_rotate %26 by %c1_i32 dim 1 : vector<32x256xf32>, i32 -> vector<32x256xf32>
    %28 = vector.broadcast %5 : vector<1x256xf32> to vector<32x256xf32>
    %29 = arith.addf %27, %28 : vector<32x256xf32>
    %c255_i32 = arith.constant 255 : i32
    %30 = tpu.dynamic_rotate %26 by %c255_i32 dim 1 : vector<32x256xf32>, i32 -> vector<32x256xf32>
    %31 = vector.broadcast %6 : vector<1x256xf32> to vector<32x256xf32>
    %32 = arith.addf %30, %31 : vector<32x256xf32>
    %33 = arith.maximumf %29, %32 : vector<32x256xf32>
    %34 = arith.maximumf %26, %33 : vector<32x256xf32>
    %c16_i32 = arith.constant 16 : i32
    %35 = tpu.dynamic_rotate %34 by %c16_i32 dim 1 : vector<32x256xf32>, i32 -> vector<32x256xf32>
    %36 = vector.broadcast %7 : vector<1x256xf32> to vector<32x256xf32>
    %37 = arith.addf %35, %36 : vector<32x256xf32>
    %c240_i32 = arith.constant 240 : i32
    %38 = tpu.dynamic_rotate %34 by %c240_i32 dim 1 : vector<32x256xf32>, i32 -> vector<32x256xf32>
    %39 = vector.broadcast %8 : vector<1x256xf32> to vector<32x256xf32>
    %40 = arith.addf %38, %39 : vector<32x256xf32>
    %41 = arith.maximumf %37, %40 : vector<32x256xf32>
    %42 = arith.maximumf %34, %41 : vector<32x256xf32>
    %43 = arith.addf %17, %42 : vector<32x256xf32>
    %44 = vector.extract_strided_slice %43 {offsets = [0, 0], sizes = [8, 256], strides = [1, 1]} : vector<32x256xf32> to vector<8x256xf32>
    %c0_26 = arith.constant 0 : index
    %c0_27 = arith.constant 0 : index
    %c0_28 = arith.constant 0 : index
    %45 = vector.load %arg8[%c0_26, %c0_27, %c0_28] : memref<1x128x256xf32, #tpu.memory_space<vmem>>, vector<1x8x256xf32>
    %46 = vector.shape_cast %45 : vector<1x8x256xf32> to vector<8x256xf32>
    %47 = vector.shape_cast %44 : vector<8x256xf32> to vector<1x8x256xf32>
    tpu.vector_store %arg8[%c0_26, %c0_27, %c0_28], %47 {strides = array<i32>} : memref<1x128x256xf32, #tpu.memory_space<vmem>>, vector<1x8x256xf32>,
    %48 = vector.extract_strided_slice %43 {offsets = [8, 0], sizes = [8, 256], strides = [1, 1]} : vector<32x256xf32> to vector<8x256xf32>
    %c0_29 = arith.constant 0 : index
    %c32 = arith.constant 32 : index
    %c0_30 = arith.constant 0 : index
    %49 = vector.load %arg8[%c0_29, %c32, %c0_30] : memref<1x128x256xf32, #tpu.memory_space<vmem>>, vector<1x8x256xf32>
    %50 = vector.shape_cast %49 : vector<1x8x256xf32> to vector<8x256xf32>
    %51 = vector.shape_cast %48 : vector<8x256xf32> to vector<1x8x256xf32>
    tpu.vector_store %arg8[%c0_29, %c32, %c0_30], %51 {strides = array<i32>} : memref<1x128x256xf32, #tpu.memory_space<vmem>>, vector<1x8x256xf32>,
    %52 = vector.extract_strided_slice %43 {offsets = [16, 0], sizes = [8, 256], strides = [1, 1]} : vector<32x256xf32> to vector<8x256xf32>
    %c0_31 = arith.constant 0 : index
    %c64 = arith.constant 64 : index
    %c0_32 = arith.constant 0 : index
    %53 = vector.load %arg8[%c0_31, %c64, %c0_32] : memref<1x128x256xf32, #tpu.memory_space<vmem>>, vector<1x8x256xf32>
    %54 = vector.shape_cast %53 : vector<1x8x256xf32> to vector<8x256xf32>
    %55 = vector.shape_cast %52 : vector<8x256xf32> to vector<1x8x256xf32>
    tpu.vector_store %arg8[%c0_31, %c64, %c0_32], %55 {strides = array<i32>} : memref<1x128x256xf32, #tpu.memory_space<vmem>>, vector<1x8x256xf32>,
    %56 = vector.extract_strided_slice %43 {offsets = [24, 0], sizes = [8, 256], strides = [1, 1]} : vector<32x256xf32> to vector<8x256xf32>
    %c0_33 = arith.constant 0 : index
    %c96 = arith.constant 96 : index
    %c0_34 = arith.constant 0 : index
    %57 = vector.load %arg8[%c0_33, %c96, %c0_34] : memref<1x128x256xf32, #tpu.memory_space<vmem>>, vector<1x8x256xf32>
    %58 = vector.shape_cast %57 : vector<1x8x256xf32> to vector<8x256xf32>
    %59 = vector.shape_cast %56 : vector<8x256xf32> to vector<1x8x256xf32>
    tpu.vector_store %arg8[%c0_33, %c96, %c0_34], %59 {strides = array<i32>} : memref<1x128x256xf32, #tpu.memory_space<vmem>>, vector<1x8x256xf32>,
    %c1_i32_35 = arith.constant 1 : i32
    %60 = tpu.dynamic_rotate %17 by %c1_i32_35 dim 1 : vector<32x256xf32>, i32 -> vector<32x256xf32>
    %61 = vector.broadcast %1 : vector<1x256xf32> to vector<32x256xf32>
    %62 = arith.mulf %60, %61 : vector<32x256xf32>
    %63 = arith.addf %17, %62 : vector<32x256xf32>
    %c255_i32_36 = arith.constant 255 : i32
    %64 = tpu.dynamic_rotate %17 by %c255_i32_36 dim 1 : vector<32x256xf32>, i32 -> vector<32x256xf32>
    %65 = vector.broadcast %2 : vector<1x256xf32> to vector<32x256xf32>
    %66 = arith.mulf %64, %65 : vector<32x256xf32>
    %67 = arith.addf %63, %66 : vector<32x256xf32>
    %c16_i32_37 = arith.constant 16 : i32
    %68 = tpu.dynamic_rotate %67 by %c16_i32_37 dim 1 : vector<32x256xf32>, i32 -> vector<32x256xf32>
    %69 = vector.broadcast %3 : vector<1x256xf32> to vector<32x256xf32>
    %70 = arith.mulf %68, %69 : vector<32x256xf32>
    %71 = arith.addf %67, %70 : vector<32x256xf32>
    %c240_i32_38 = arith.constant 240 : i32
    %72 = tpu.dynamic_rotate %67 by %c240_i32_38 dim 1 : vector<32x256xf32>, i32 -> vector<32x256xf32>
    %73 = vector.broadcast %4 : vector<1x256xf32> to vector<32x256xf32>
    %74 = arith.mulf %72, %73 : vector<32x256xf32>
    %75 = arith.addf %71, %74 : vector<32x256xf32>
    %76 = vector.broadcast %0 : vector<1x256xf32> to vector<32x256xf32>
    %77 = arith.mulf %75, %76 : vector<32x256xf32>
    %78 = arith.addf %77, %43 : vector<32x256xf32>
    %79 = vector.extract_strided_slice %78 {offsets = [0, 0], sizes = [8, 256], strides = [1, 1]} : vector<32x256xf32> to vector<8x256xf32>
    %c0_39 = arith.constant 0 : index
    %c8_40 = arith.constant 8 : index
    %c0_41 = arith.constant 0 : index
    %80 = vector.load %arg8[%c0_39, %c8_40, %c0_41] : memref<1x128x256xf32, #tpu.memory_space<vmem>>, vector<1x8x256xf32>
    %81 = vector.shape_cast %80 : vector<1x8x256xf32> to vector<8x256xf32>
    %82 = vector.shape_cast %79 : vector<8x256xf32> to vector<1x8x256xf32>
    tpu.vector_store %arg8[%c0_39, %c8_40, %c0_41], %82 {strides = array<i32>} : memref<1x128x256xf32, #tpu.memory_space<vmem>>, vector<1x8x256xf32>,
    %83 = vector.extract_strided_slice %78 {offsets = [8, 0], sizes = [8, 256], strides = [1, 1]} : vector<32x256xf32> to vector<8x256xf32>
    %c0_42 = arith.constant 0 : index
    %c40 = arith.constant 40 : index
    %c0_43 = arith.constant 0 : index
    %84 = vector.load %arg8[%c0_42, %c40, %c0_43] : memref<1x128x256xf32, #tpu.memory_space<vmem>>, vector<1x8x256xf32>
    %85 = vector.shape_cast %84 : vector<1x8x256xf32> to vector<8x256xf32>
    %86 = vector.shape_cast %83 : vector<8x256xf32> to vector<1x8x256xf32>
    tpu.vector_store %arg8[%c0_42, %c40, %c0_43], %86 {strides = array<i32>} : memref<1x128x256xf32, #tpu.memory_space<vmem>>, vector<1x8x256xf32>,
    %87 = vector.extract_strided_slice %78 {offsets = [16, 0], sizes = [8, 256], strides = [1, 1]} : vector<32x256xf32> to vector<8x256xf32>
    %c0_44 = arith.constant 0 : index
    %c72 = arith.constant 72 : index
    %c0_45 = arith.constant 0 : index
    %88 = vector.load %arg8[%c0_44, %c72, %c0_45] : memref<1x128x256xf32, #tpu.memory_space<vmem>>, vector<1x8x256xf32>
    %89 = vector.shape_cast %88 : vector<1x8x256xf32> to vector<8x256xf32>
    %90 = vector.shape_cast %87 : vector<8x256xf32> to vector<1x8x256xf32>
    tpu.vector_store %arg8[%c0_44, %c72, %c0_45], %90 {strides = array<i32>} : memref<1x128x256xf32, #tpu.memory_space<vmem>>, vector<1x8x256xf32>,
    %91 = vector.extract_strided_slice %78 {offsets = [24, 0], sizes = [8, 256], strides = [1, 1]} : vector<32x256xf32> to vector<8x256xf32>
    %c0_46 = arith.constant 0 : index
    %c104 = arith.constant 104 : index
    %c0_47 = arith.constant 0 : index
    %92 = vector.load %arg8[%c0_46, %c104, %c0_47] : memref<1x128x256xf32, #tpu.memory_space<vmem>>, vector<1x8x256xf32>
    %93 = vector.shape_cast %92 : vector<1x8x256xf32> to vector<8x256xf32>
    %94 = vector.shape_cast %91 : vector<8x256xf32> to vector<1x8x256xf32>
    tpu.vector_store %arg8[%c0_46, %c104, %c0_47], %94 {strides = array<i32>} : memref<1x128x256xf32, #tpu.memory_space<vmem>>, vector<1x8x256xf32>,
    %c1_i32_48 = arith.constant 1 : i32
    %95 = tpu.dynamic_rotate %78 by %c1_i32_48 dim 1 : vector<32x256xf32>, i32 -> vector<32x256xf32>
    %96 = vector.broadcast %1 : vector<1x256xf32> to vector<32x256xf32>
    %97 = arith.mulf %95, %96 : vector<32x256xf32>
    %98 = arith.addf %78, %97 : vector<32x256xf32>
    %c255_i32_49 = arith.constant 255 : i32
    %99 = tpu.dynamic_rotate %78 by %c255_i32_49 dim 1 : vector<32x256xf32>, i32 -> vector<32x256xf32>
    %100 = vector.broadcast %2 : vector<1x256xf32> to vector<32x256xf32>
    %101 = arith.mulf %99, %100 : vector<32x256xf32>
    %102 = arith.addf %98, %101 : vector<32x256xf32>
    %c16_i32_50 = arith.constant 16 : i32
    %103 = tpu.dynamic_rotate %102 by %c16_i32_50 dim 1 : vector<32x256xf32>, i32 -> vector<32x256xf32>
    %104 = vector.broadcast %3 : vector<1x256xf32> to vector<32x256xf32>
    %105 = arith.mulf %103, %104 : vector<32x256xf32>
    %106 = arith.addf %102, %105 : vector<32x256xf32>
    %c240_i32_51 = arith.constant 240 : i32
    %107 = tpu.dynamic_rotate %102 by %c240_i32_51 dim 1 : vector<32x256xf32>, i32 -> vector<32x256xf32>
    %108 = vector.broadcast %4 : vector<1x256xf32> to vector<32x256xf32>
    %109 = arith.mulf %107, %108 : vector<32x256xf32>
    %110 = arith.addf %106, %109 : vector<32x256xf32>
    %111 = vector.broadcast %0 : vector<1x256xf32> to vector<32x256xf32>
    %112 = arith.mulf %110, %111 : vector<32x256xf32>
    %113 = arith.addf %42, %112 : vector<32x256xf32>
    %114 = vector.extract_strided_slice %113 {offsets = [0, 0], sizes = [8, 256], strides = [1, 1]} : vector<32x256xf32> to vector<8x256xf32>
    %c0_52 = arith.constant 0 : index
    %c16 = arith.constant 16 : index
    %c0_53 = arith.constant 0 : index
    %115 = vector.load %arg8[%c0_52, %c16, %c0_53] : memref<1x128x256xf32, #tpu.memory_space<vmem>>, vector<1x8x256xf32>
    %116 = vector.shape_cast %115 : vector<1x8x256xf32> to vector<8x256xf32>
    %117 = vector.shape_cast %114 : vector<8x256xf32> to vector<1x8x256xf32>
    tpu.vector_store %arg8[%c0_52, %c16, %c0_53], %117 {strides = array<i32>} : memref<1x128x256xf32, #tpu.memory_space<vmem>>, vector<1x8x256xf32>,
    %118 = vector.extract_strided_slice %113 {offsets = [8, 0], sizes = [8, 256], strides = [1, 1]} : vector<32x256xf32> to vector<8x256xf32>
    %c0_54 = arith.constant 0 : index
    %c48 = arith.constant 48 : index
    %c0_55 = arith.constant 0 : index
    %119 = vector.load %arg8[%c0_54, %c48, %c0_55] : memref<1x128x256xf32, #tpu.memory_space<vmem>>, vector<1x8x256xf32>
    %120 = vector.shape_cast %119 : vector<1x8x256xf32> to vector<8x256xf32>
    %121 = vector.shape_cast %118 : vector<8x256xf32> to vector<1x8x256xf32>
    tpu.vector_store %arg8[%c0_54, %c48, %c0_55], %121 {strides = array<i32>} : memref<1x128x256xf32, #tpu.memory_space<vmem>>, vector<1x8x256xf32>,
    %122 = vector.extract_strided_slice %113 {offsets = [16, 0], sizes = [8, 256], strides = [1, 1]} : vector<32x256xf32> to vector<8x256xf32>
    %c0_56 = arith.constant 0 : index
    %c80 = arith.constant 80 : index
    %c0_57 = arith.constant 0 : index
    %123 = vector.load %arg8[%c0_56, %c80, %c0_57] : memref<1x128x256xf32, #tpu.memory_space<vmem>>, vector<1x8x256xf32>
    %124 = vector.shape_cast %123 : vector<1x8x256xf32> to vector<8x256xf32>
    %125 = vector.shape_cast %122 : vector<8x256xf32> to vector<1x8x256xf32>
    tpu.vector_store %arg8[%c0_56, %c80, %c0_57], %125 {strides = array<i32>} : memref<1x128x256xf32, #tpu.memory_space<vmem>>, vector<1x8x256xf32>,
    %126 = vector.extract_strided_slice %113 {offsets = [24, 0], sizes = [8, 256], strides = [1, 1]} : vector<32x256xf32> to vector<8x256xf32>
    %c0_58 = arith.constant 0 : index
    %c112 = arith.constant 112 : index
    %c0_59 = arith.constant 0 : index
    %127 = vector.load %arg8[%c0_58, %c112, %c0_59] : memref<1x128x256xf32, #tpu.memory_space<vmem>>, vector<1x8x256xf32>
    %128 = vector.shape_cast %127 : vector<1x8x256xf32> to vector<8x256xf32>
    %129 = vector.shape_cast %126 : vector<8x256xf32> to vector<1x8x256xf32>
    tpu.vector_store %arg8[%c0_58, %c112, %c0_59], %129 {strides = array<i32>} : memref<1x128x256xf32, #tpu.memory_space<vmem>>, vector<1x8x256xf32>,
    %c1_i32_60 = arith.constant 1 : i32
    %130 = tpu.dynamic_rotate %113 by %c1_i32_60 dim 1 : vector<32x256xf32>, i32 -> vector<32x256xf32>
    %131 = vector.broadcast %5 : vector<1x256xf32> to vector<32x256xf32>
    %132 = arith.addf %130, %131 : vector<32x256xf32>
    %c255_i32_61 = arith.constant 255 : i32
    %133 = tpu.dynamic_rotate %113 by %c255_i32_61 dim 1 : vector<32x256xf32>, i32 -> vector<32x256xf32>
    %134 = vector.broadcast %6 : vector<1x256xf32> to vector<32x256xf32>
    %135 = arith.addf %133, %134 : vector<32x256xf32>
    %136 = arith.maximumf %132, %135 : vector<32x256xf32>
    %137 = arith.maximumf %113, %136 : vector<32x256xf32>
    %c16_i32_62 = arith.constant 16 : i32
    %138 = tpu.dynamic_rotate %137 by %c16_i32_62 dim 1 : vector<32x256xf32>, i32 -> vector<32x256xf32>
    %139 = vector.broadcast %7 : vector<1x256xf32> to vector<32x256xf32>
    %140 = arith.addf %138, %139 : vector<32x256xf32>
    %c240_i32_63 = arith.constant 240 : i32
    %141 = tpu.dynamic_rotate %137 by %c240_i32_63 dim 1 : vector<32x256xf32>, i32 -> vector<32x256xf32>
    %142 = vector.broadcast %8 : vector<1x256xf32> to vector<32x256xf32>
    %143 = arith.addf %141, %142 : vector<32x256xf32>
    %144 = arith.maximumf %140, %143 : vector<32x256xf32>
    %145 = arith.maximumf %137, %144 : vector<32x256xf32>
    %146 = arith.addf %43, %145 : vector<32x256xf32>
    %147 = vector.extract_strided_slice %146 {offsets = [0, 0], sizes = [8, 256], strides = [1, 1]} : vector<32x256xf32> to vector<8x256xf32>
    %c0_64 = arith.constant 0 : index
    %c24 = arith.constant 24 : index
    %c0_65 = arith.constant 0 : index
    %148 = vector.load %arg8[%c0_64, %c24, %c0_65] : memref<1x128x256xf32, #tpu.memory_space<vmem>>, vector<1x8x256xf32>
    %149 = vector.shape_cast %148 : vector<1x8x256xf32> to vector<8x256xf32>
    %150 = vector.shape_cast %147 : vector<8x256xf32> to vector<1x8x256xf32>
    tpu.vector_store %arg8[%c0_64, %c24, %c0_65], %150 {strides = array<i32>} : memref<1x128x256xf32, #tpu.memory_space<vmem>>, vector<1x8x256xf32>,
    %151 = vector.extract_strided_slice %146 {offsets = [8, 0], sizes = [8, 256], strides = [1, 1]} : vector<32x256xf32> to vector<8x256xf32>
    %c0_66 = arith.constant 0 : index
    %c56 = arith.constant 56 : index
    %c0_67 = arith.constant 0 : index
    %152 = vector.load %arg8[%c0_66, %c56, %c0_67] : memref<1x128x256xf32, #tpu.memory_space<vmem>>, vector<1x8x256xf32>
    %153 = vector.shape_cast %152 : vector<1x8x256xf32> to vector<8x256xf32>
    %154 = vector.shape_cast %151 : vector<8x256xf32> to vector<1x8x256xf32>
    tpu.vector_store %arg8[%c0_66, %c56, %c0_67], %154 {strides = array<i32>} : memref<1x128x256xf32, #tpu.memory_space<vmem>>, vector<1x8x256xf32>,
    %155 = vector.extract_strided_slice %146 {offsets = [16, 0], sizes = [8, 256], strides = [1, 1]} : vector<32x256xf32> to vector<8x256xf32>
    %c0_68 = arith.constant 0 : index
    %c88 = arith.constant 88 : index
    %c0_69 = arith.constant 0 : index
    %156 = vector.load %arg8[%c0_68, %c88, %c0_69] : memref<1x128x256xf32, #tpu.memory_space<vmem>>, vector<1x8x256xf32>
    %157 = vector.shape_cast %156 : vector<1x8x256xf32> to vector<8x256xf32>
    %158 = vector.shape_cast %155 : vector<8x256xf32> to vector<1x8x256xf32>
    tpu.vector_store %arg8[%c0_68, %c88, %c0_69], %158 {strides = array<i32>} : memref<1x128x256xf32, #tpu.memory_space<vmem>>, vector<1x8x256xf32>,
    %159 = vector.extract_strided_slice %146 {offsets = [24, 0], sizes = [8, 256], strides = [1, 1]} : vector<32x256xf32> to vector<8x256xf32>
    %c0_70 = arith.constant 0 : index
    %c120 = arith.constant 120 : index
    %c0_71 = arith.constant 0 : index
    %160 = vector.load %arg8[%c0_70, %c120, %c0_71] : memref<1x128x256xf32, #tpu.memory_space<vmem>>, vector<1x8x256xf32>
    %161 = vector.shape_cast %160 : vector<1x8x256xf32> to vector<8x256xf32>
    %162 = vector.shape_cast %159 : vector<8x256xf32> to vector<1x8x256xf32>
    tpu.vector_store %arg8[%c0_70, %c120, %c0_71], %162 {strides = array<i32>} : memref<1x128x256xf32, #tpu.memory_space<vmem>>, vector<1x8x256xf32>,
    return
  }
  func.func @transform_0(%arg0: i32) -> (i32, i32) {
    %c0_i32 = arith.constant 0 : i32
    %c0_i32_0 = arith.constant 0 : i32
    %c0_i32_1 = arith.constant 0 : i32
    return %c0_i32, %c0_i32_0 : i32, i32
  }
  func.func @transform_1(%arg0: i32) -> (i32, i32, i32) {
    %c0_i32 = arith.constant 0 : i32
    %c0_i32_0 = arith.constant 0 : i32
    %c0_i32_1 = arith.constant 0 : i32
    return %arg0, %c0_i32, %c0_i32_0 : i32, i32, i32
  }
  func.func @transform_2(%arg0: i32) -> (i32, i32, i32) {
    %c0_i32 = arith.constant 0 : i32
    %c0_i32_0 = arith.constant 0 : i32
    %c0_i32_1 = arith.constant 0 : i32
    return %arg0, %c0_i32, %c0_i32_0 : i32, i32, i32
  }
  func.func @transform_3(%arg0: i32) -> (i32, i32) {
    %c0_i32 = arith.constant 0 : i32
    %c0_i32_0 = arith.constant 0 : i32
    %c0_i32_1 = arith.constant 0 : i32
    return %c0_i32, %c0_i32_0 : i32, i32
  }
  func.func @transform_4(%arg0: i32) -> (i32, i32) {
    %c0_i32 = arith.constant 0 : i32
    %c0_i32_0 = arith.constant 0 : i32
    %c0_i32_1 = arith.constant 0 : i32
    return %c0_i32, %c0_i32_0 : i32, i32
  }
  func.func @transform_5(%arg0: i32) -> (i32, i32) {
    %c0_i32 = arith.constant 0 : i32
    %c0_i32_0 = arith.constant 0 : i32
    %c0_i32_1 = arith.constant 0 : i32
    return %c0_i32, %c0_i32_0 : i32, i32
  }
  func.func @transform_6(%arg0: i32) -> (i32, i32) {
    %c0_i32 = arith.constant 0 : i32
    %c0_i32_0 = arith.constant 0 : i32
    %c0_i32_1 = arith.constant 0 : i32
    return %c0_i32, %c0_i32_0 : i32, i32
  }
  func.func @transform_7(%arg0: i32) -> (i32, i32, i32) {
    %c0_i32 = arith.constant 0 : i32
    %c0_i32_0 = arith.constant 0 : i32
    %c0_i32_1 = arith.constant 0 : i32
    return %arg0, %c0_i32, %c0_i32_0 : i32, i32, i32
  }
}

</mosaic_0001>

<bundles_post_ra>
// kernel: tpu_custom_call.1
= control target key start
LH: loop header
LB: loop body
LE: loop exit
PB: predicated region body
PF: predicated region fallthrough
CT: control target
= control target key end

     0   :  { %s4449_s0 = inlined_call_operand.vmem [shape: f32[16,256], index: 0, kind: input, shape index: {}]   ;;  %s4450_s1 = inlined_call_operand.hbm [shape: f32[2,32,256], index: 1, kind: input, shape index: {}]   ;;  %s4451_s2 = inlined_call_operand.hbm [shape: f32[2,32,256], index: 2, kind: input, shape index: {}]   ;;  %s4452_s3 = inlined_call_operand.vmem [shape: f32[32,32], index: 3, kind: input, shape index: {}]   ;;  %s4453_s4 = inlined_call_operand.vmem [shape: f32[32,1], index: 4, kind: input, shape index: {}]   ;;  %s4454_s5 = inlined_call_operand.hbm [shape: f32[32,32], index: 5, kind: input, shape index: {}]   ;;  %s4455_s6 = inlined_call_operand.vmem [shape: f32[32,1], index: 6, kind: input, shape index: {}]   ;;  %s4456_s7 = inlined_call_operand.hbm [shape: f32[2,128,256], index: 7, kind: output, shape index: {}]  }
   0x1   :  { %4477 = sst [smem:[#allocation25_spill]] %s4450_s1 }
   0x2   :  { %4478 = sst [smem:[#allocation26_spill]] %s4454_s5 }
   0x3   :  { %12 = vsyncpa [#allocation3], 0 }
   0x4   :  { %14 = vsyncpa [#allocation3 + $0x1], 0 }
   0x5   :  { %15 = vsyncpa [#allocation6], 0 }
   0x6   :  { %17 = vsyncpa [#allocation6 + $0x1], 0 }
   0x7   :  { %18 = vsyncpa [#allocation4], 0 }
   0x8   :  { %20 = vsyncpa [#allocation4 + $0x1], 0  ;;  %s2814_s24 = smov 0   ;;  %s2816_s25 = smov 0  }
   0x9   :  { %s2818_s26 = smov 0   ;;  %s2820_s27 = smov 0  }
   0xa LB: > { %4479 = sst [smem:[#allocation13_spill]] %s2757_s26  ;;  %s2835_s28 = sadd.s32 4294967295, %s2761_s27   ;;  %s2761_s27 = sphi %s2820_s27, %s4508_s27   ;;  %s2757_s26 = sphi %s2818_s26, %s4510_s26   ;;  %s2753_s25 = sphi %s2816_s25, %s4512_s25   ;;  %s2749_s24 = sphi %s2814_s24, %s4511_s24  }
   0xb   : > { %s2491_s29 = sadd.s32 4294967294, %s2761_s27   ;;  %p67_p0 = scmp.ne.s32.totalorder %s2753_s25, %s2749_s24 }
   0xc   : > { %p68_p1 = scmp.eq.s32.totalorder %s2835_s28, 0  ;;  %p201_p2 = scmp.eq.s32.totalorder %s2835_s28, 1 }
   0xd   : > { %p207_p3 = scmp.eq.s32.totalorder %s2491_s29, 1  ;;  %p2492_p5 = scmp.ge.s32.totalorder %s2761_s27, 1 }
   0xe   : > { %p2844_p4 = por %p68_p1, %p67_p0  ;;  %p214_p7 = scmp.lt.s32.totalorder %s2761_s27, 3 }
   0xf   : > { %p2849_p6 = por %p207_p3, %p67_p0  ;;  %s4483_s5 = sld [smem:[#allocation26_spill]] }
  0x10   : > { %p2857_p8 = pnand %p2492_p5, %p214_p7  ;;  %s2763_s13 = smov [#allocation7]  }
  0x11   : > { %s4481_s8 = scalar_select %p2849_p6, 1, 0 }
  0x12   : > { %p2532_p9 = pneg %p2857_p8  ;;  %s236_s14 = sshll.u32 %s2763_s13, 4  ;;  %s237_s14 = int_to_ptr.vmem [resolvable:$true] %s236_s14 }
  0x13   : > { %4482 = sst [smem:[#allocation14_spill]] %s4481_s8  ;;  %s2867_s15 = sadd.s32 1, %s2761_s27  }
  0x14   : > { %p2533_p10 = pnand %p2532_p9, %p68_p1  ;;  %4485 = sst [smem:[#allocation15_spill]] %s2867_s15 }
  0x15   : > { %s234_s11 = sshll.u32 %s4483_s5, 4  ;;  %s2764_s16 = smov 128   ;;  %s235_s11 = int_to_ptr.hbm [resolvable:$true] %s234_s11 }
  0x16   : > { %s2765_s17 = smov 8   ;;  %s51_s18 = ssub.s32 %s2761_s27, %s2867_s15 }
  0x17   : > { %2535 = dma.hbm_to_vmem [thread:$0]  (!%p2533_p10), %s235_s11, 512, %s237_s14, [#allocation6], %s2764_s16, %s2764_s16, %s2765_s17  }
  0x18   : > { %s54_s19 = sadd.s32 1, %s2757_s26  ;;  %p52_p12 = scmp.eq.s32.totalorder %s51_s18, 0 }
  0x19   : > { %p61_p13 = scmp.ne.s32.totalorder %s2757_s26, %s2753_s25  ;;  %p62_p0 = scmp.eq.s32.totalorder %s2761_s27, 0 }
  0x1a   : > { %p2548_p3 = scmp.lt.s32.totalorder %s2761_s27, 2  ;;  %s253_s22 = sand.u32 1, %s2757_s26  }
  0x1b   : > { %s2877_s20 = scalar_select %p52_p12, %s2757_s26, %s54_s19  }
  0x1c   : > { %p63_p5 = por %p62_p0, %p61_p13  ;;  %p2881_p7 = por %p201_p2, %p61_p13 }
  0x1d   : > { %4486 = sst [smem:[#allocation16_spill]] %s2877_s20  ;;  %s2519_s23 = sshll.u32 %s2761_s27, 6 }
  0x1e   : > { %s2887_s29 = sshll.u32 %s253_s22, 6  ;;  %s4488_s1 = sld [smem:[#allocation25_spill]] }
  0x1f   : > { %s257_s14 = scalar_lea.vmem [#allocation2], %s2887_s29  ;;  %p2895_p9 = pnand %p2548_p3, %p63_p5 }
  0x20   : > { %s265_s16 = sshll.u32 %s257_s14, 4  ;;  %s284_s5 = scalar_lea.hbm %s4451_s2, %s2519_s23  ;;  %s266_s16 = int_to_ptr.vmem [resolvable:$true] %s265_s16 }
  0x21   : > { %s254_s20 = scalar_lea.sflag [#allocation3], %s253_s22  ;;  %p2631_p10 = pneg %p2895_p9 }
  0x24   : > { %s262_s11 = scalar_lea.hbm %s4488_s1, %s2519_s23  ;;  %s2634_s26 = scalar_lea.hbm %s4488_s1, 128 }
  0x25   : > { %s263_s13 = sshll.u32 %s262_s11, 4  ;;  %s264_s13 = int_to_ptr.hbm [resolvable:$true] %s263_s13 }
  0x26   : > { %s2627_s9 = sshra.s32 %s264_s13, 4  ;;  %s2628_s9 = int_to_ptr.hbm [resolvable:$true] %s2627_s9 }
  0x27   : > { %s2629_s10 = scalar_lea.hbm %s2628_s9, 64  ;;  %p2635_p0 = scmp.lt.s32.totalorder %s2628_s9, %s4488_s1 }
  0x28   : > { %p2630_p2 = scmp.ne.s32.totalorder %s2628_s9, %s2629_s10  ;;  %p2636_p3 = scmp.lt.s32.totalorder %s2634_s26, %s2629_s10 }
  0x2a   : > { %p2632_p12 = pnand %p2631_p10, %p2630_p2  ;;  %p2637_p5 = por %p2636_p3, %p2635_p0 }
  0x2c   : > { %p2633_p13 = pneg %p2632_p12 }
  0x2e   : > { %p2638_p11 = pnand %p2637_p5, %p2633_p13 }
  0x30   : > { %2641 = shalt.err (!%p2638_p11)
}
  0x31   : > { %s2766_s22 = smov 256   ;;  %s2767_s23 = smov 16  }
  0x32   : > { %2539 = dma.hbm_to_vmem [thread:$0]  (!%p2895_p9), %s264_s13, 1024, %s266_s16, %s254_s20, %s2766_s22, %s2766_s22, %s2767_s23  }
  0x33   : > { %s285_s19 = sshll.u32 %s284_s5, 4  ;;  %s279_s8 = scalar_lea.vmem [#allocation5], %s2887_s29  ;;  %s286_s19 = int_to_ptr.hbm [resolvable:$true] %s285_s19 }
  0x34   : > { %s287_s11 = sshll.u32 %s279_s8, 4  ;;  %s275_s14 = sand.u32 1, %s2761_s27   ;;  %s288_s11 = int_to_ptr.vmem [resolvable:$true] %s287_s11 }
  0x35   : > { %s276_s15 = scalar_lea.sflag [#allocation6], %s275_s14  ;;  %s2657_s9 = sshra.s32 %s286_s19, 4  ;;  %s2658_s9 = int_to_ptr.hbm [resolvable:$true] %s2657_s9 }
  0x36   : > { %s2659_s26 = scalar_lea.hbm %s2658_s9, 64  ;;  %s2664_s1 = scalar_lea.hbm %s4451_s2, 128 }
  0x37   : > { %p2660_p2 = scmp.ne.s32.totalorder %s2658_s9, %s2659_s26  ;;  %p2665_p13 = scmp.lt.s32.totalorder %s2658_s9, %s4451_s2 }
  0x38   : > { %p2666_p0 = scmp.lt.s32.totalorder %s2664_s1, %s2659_s26 }
  0x39   : > { %p2662_p11 = pnand %p2660_p2, %p2631_p10 }
  0x3a   : > { %p2667_p3 = por %p2666_p0, %p2665_p13 }
  0x3b   : > { %p2663_p12 = pneg %p2662_p11 }
  0x3d   : > { %p2668_p5 = pnand %p2667_p3, %p2663_p12 }
  0x3f   : > { %2671 = shalt.err (!%p2668_p5)
}
  0x40   : > { %2542 = dma.hbm_to_vmem [thread:$0]  (!%p2895_p9), %s286_s19, 1024, %s288_s11, %s276_s15, %s2766_s22, %s2766_s22, %s2767_s23  }
  0x41   : > { %299 = sbr.rel (%p2857_p8) target bundleno = 1250 (0x4e2), region = 48 }
  0x46   : > { %s2931_s8 = sand.u32 1, %s2753_s25  }
  0x47   : > { %s2502_s29 = sshll.u32 %s2931_s8, 6  ;;  %s302_s13 = scalar_lea.sflag [#allocation3], %s2931_s8 }
  0x48   : > { %s2935_s16 = scalar_lea.vmem [#allocation2], %s2502_s29 }
  0x49   : > { %2732 = dma.done.wait (%p2844_p4), %s302_s13, 1024  }
  0x4a   : > { %2734 = vsyncadd (%p2844_p4), %s302_s13, 4294966272  ;;  %s311_s1 = sand.u32 1, %s2835_s28   ;;  %s2942_s17 = scalar_lea.vmem [#allocation5], %s2502_s29 }
  0x4b   : > { %s312_s12 = scalar_lea.sflag [#allocation6], %s311_s1 }
  0x4c   : > { %2736 = dma.done.wait (%p2844_p4), %s312_s12, 1024  }
  0x4d   : > { %2738 = vsyncadd (%p2844_p4), %s312_s12, 4294966272 }
  0x4e   : > { %2740 = dma.done.wait (%p68_p1), [#allocation6], 512  }
  0x4f   : > { %2742 = vsyncadd (%p68_p1), [#allocation6], 4294966784  ;;  %v2768_v0 = vmov 0   ;;  %vm418_vm0 = vcmask 261120   ;;  %v380_v1 = vld [vmem:[%s2935_s16 + $0x30] sm:$0xff]  ;;  %v378_v2 = vld [vmem:[%s2935_s16 + $0x20] sm:$0xff] }
  0x50   : > { %2594 = vset.pattern.permute.xlu0 %v2768_v0  ;;  %2595 = vset.pattern.permute.xlu1 %v2768_v0  ;;  %v376_v3 = vld [vmem:[%s2935_s16 + $0x10] sm:$0xff]  ;;  %v388_v4 = vmax.f32 %v380_v1, 0.0  ;;  %v386_v5 = vmax.f32 %v378_v2, 0.0  ;;  %v374_v7 = vld [vmem:[%s2935_s16] sm:$0xff]  ;;  %v381_v9 = vld [vmem:[%s2935_s16 + $0x38] sm:$0xff]  ;;  %s2769_s14 = smov 127  }
  0x51   : > { %2596 = vset.pattern.permute.xlu2 %v2768_v0  ;;  %v384_v6 = vmax.f32 %v376_v3, 0.0  ;;  %v390_v8 = vld [vmem:[%s4452_s3] sm:$0xff]  ;;  %v382_v10 = vmax.f32 %v374_v7, 0.0  ;;  %v389_v12 = vmax.f32 %v381_v9, 0.0  ;;  %v391_v13 = vld [vmem:[%s4452_s3 + $0x8] sm:$0xff]  ;;  %v392_v47 = vld [vmem:[%s4452_s3 + $0x10] sm:$0xff] }
  0x52   : > { %v420_v11 = vsel %vm418_vm0, %v390_v8, 0  ;;  %v379_v14 = vld [vmem:[%s2935_s16 + $0x28] sm:$0xff]  ;;  %v2965_v15 = vand.u32 4294901760, %v388_v4  ;;  %v2967_v16 = vand.u32 4294901760, %v386_v5  ;;  %v394_v19 = vld [vmem:[%s4453_s4] sm:$0xff]  ;;  %v423_v22 = vsel %vm418_vm0, %v391_v13, 0 }
  0x53   : > { %v2969_v17 = vand.u32 4294901760, %v384_v6  ;;  %v2971_v18 = vand.u32 4294901760, %v420_v11  ;;  %v2976_v20 = vand.u32 4294901760, %v382_v10  ;;  %v2978_v21 = vand.u32 4294901760, %v389_v12  ;;  %400 = vperm.xlu0 %2594, %v394_v19   ;;  %v377_v48 = vld [vmem:[%s2935_s16 + $0x18] sm:$0xff]  ;;  %v375_v52 = vld [vmem:[%s2935_s16 + $0x8] sm:$0xff] }
  0x54   : > { %v387_v23 = vmax.f32 %v379_v14, 0.0  ;;  %444 = vmatpush.msra.mxu0 %v2965_v15  ;;  %v497_v24 = vsub.f32 %v388_v4, %v2965_v15  ;;  %v2984_v25 = vsub.f32 %v386_v5, %v2967_v16  ;;  %595 = vmatpush.msra.mxu3 %v2965_v15  ;;  %v2990_v27 = vand.u32 4294901760, %v423_v22  ;;  %v393_v56 = vld [vmem:[%s4452_s3 + $0x18] sm:$0xff]  ;;  %v395_v9 = vld [vmem:[%s4453_s4 + $0x8] sm:$0xff]  ;;  %s2770_s15 = smov 1   ;;  %s2771_s20 = smov 112  }
  0x55   : > { %v2988_v26 = vsub.f32 %v384_v6, %v2969_v17  ;;  %v2993_v28 = vsub.f32 %v420_v11, %v2971_v18  ;;  %v2996_v29 = vsub.f32 %v382_v10, %v2976_v20  ;;  %v2999_v30 = vsub.f32 %v389_v12, %v2978_v21  ;;  %s2772_s5 = smov 16   ;;  %s2505_s18 = sshll.u32 %s2931_s8, 8 }
  0x56   : > { %v3001_v31 = vand.u32 4294901760, %v387_v23  ;;  %446 = vmatpush.msra.mxu0 %v2967_v16  ;;  %551 = vmatpush.msra.mxu2 %v497_v24  ;;  %v498_v32 = vand.u32 4294901760, %v497_v24  ;;  %v504_v33 = vand.u32 4294901760, %v2984_v25  ;;  %v3007_v35 = vsub.f32 %v423_v22, %v2990_v27  ;;  %s3798_s29 = scalar_lea.vmem [#allocation8], %s2505_s18  ;;  %s2371_s1 = scalar_lea.sflag [#allocation4], %s2931_s8 }
  0x57   : > { %v510_v34 = vand.u32 4294901760, %v2988_v26  ;;  %597 = vmatpush.msra.mxu3 %v2967_v16  ;;  %v3011_v36 = vand.u32 4294901760, %v2993_v28  ;;  %v776_v37 = vand.u32 4294901760, %v2999_v30  ;;  %v516_v38 = vand.u32 4294901760, %v2996_v29  ;;  %s2707_s23 = scalar_lea.hbm %s4456_s7, 512 }
  0x58   : > { %v3016_v39 = vsub.f32 %v387_v23, %v3001_v31  ;;  %448 = vmatpush.msra.mxu0 %v2969_v17  ;;  %554 = vmatpush.msra.mxu2 %v2984_v25  ;;  %v499_v40 = vsub.f32 %v497_v24, %v498_v32  ;;  %v505_v41 = vsub.f32 %v2984_v25, %v504_v33  ;;  %v3029_v45 = vand.u32 4294901760, %v3007_v35 }
  0x59   : > { %v511_v42 = vsub.f32 %v2988_v26, %v510_v34  ;;  %v454_v43 = vsub.f32 %v2993_v28, %v3011_v36  ;;  %599 = vmatpush.msra.mxu3 %v2969_v17  ;;  %v777_v44 = vsub.f32 %v2999_v30, %v776_v37  ;;  %v517_v51 = vsub.f32 %v2996_v29, %v516_v38 }
  0x5a   : > { %v782_v46 = vand.u32 4294901760, %v3016_v39  ;;  %450 = vmatpush.msra.mxu0 %v2976_v20  ;;  %557 = vmatpush.msra.mxu2 %v2988_v26  ;;  %v500_v49 = vand.u32 4294901760, %v499_v40  ;;  %v506_v50 = vand.u32 4294901760, %v505_v41  ;;  %v426_v58 = vsel %vm418_vm0, %v392_v47, 0 }
  0x5b   : > { %v3042_v53 = vand.u32 4294901760, %v454_v43  ;;  %601 = vmatpush.msra.mxu3 %v2976_v20  ;;  %v778_v54 = vand.u32 4294901760, %v777_v44  ;;  %v512_v57 = vand.u32 4294901760, %v511_v42  ;;  %v385_v59 = vmax.f32 %v377_v48, 0.0  ;;  %405 = vperm.xlu0 %2594, %v395_v9   ;;  %v989_v42 = vld [vmem:[%s2942_s17 + $0x10] sm:$0xff] }
  0x5c   : > { %642 = vmatpush.msrb.mxu0 %v498_v32  ;;  %v783_v55 = vsub.f32 %v3016_v39, %v782_v46  ;;  %501 = vmatpush.msra.mxu1 %v500_v49  ;;  %v462_v60 = vsub.f32 %v3007_v35, %v3029_v45  ;;  %v3057_v62 = vand.u32 4294901760, %v426_v58  ;;  %v383_v63 = vmax.f32 %v375_v52, 0.0 }
  0x5d   : > { %560 = vmatpush.msra.mxu2 %v2996_v29  ;;  %456 = vmatmul.f32.vlgmr.msra.gmra.mxu0 %v3042_v53  ;;  %v518_v0 = vand.u32 4294901760, %v517_v51  ;;  %v725_v1 = vand.u32 4294901760, %v385_v59  ;;  %v429_v2 = vsel %vm418_vm0, %v393_v56, 0  ;;  %v997_v44 = vmax.f32 %v989_v42, 0.0 }
  0x5e   : > { %563 = vmatmul.f32.vlgmr.msra.gmra.mxu2 %v2993_v28  ;;  %v784_v61 = vand.u32 4294901760, %v783_v55  ;;  %507 = vmatpush.msra.mxu1 %v506_v50  ;;  %v3063_v3 = vsub.f32 %v426_v58, %v3057_v62  ;;  %v3065_v4 = vand.u32 4294901760, %v383_v63  ;;  %v3067_v6 = vand.u32 4294901760, %v462_v60  ;;  %v987_v50 = vld [vmem:[%s2942_s17] sm:$0xff] }
  0x5f   : > { %605 = vmatmul.f32.vlgmr.msra.gmra.mxu3 %v3011_v36  ;;  %722 = vmatpush.msrb.mxu2 %v2978_v21  ;;  %v787_v5 = vsub.f32 %v385_v59, %v725_v1  ;;  %v3073_v8 = vand.u32 4294901760, %v429_v2  ;;  %v1059_v47 = vand.u32 4294901760, %v997_v44  ;;  %v995_v52 = vmax.f32 %v987_v50, 0.0 }
  0x60   : > { %779 = vmatpush.msrb.mxu3 %v778_v54  ;;  %513 = vmatpush.msra.mxu1 %v512_v57  ;;  %v3071_v7 = vand.u32 4294901760, %v3063_v3  ;;  %v793_v10 = vsub.f32 %v383_v63, %v3065_v4  ;;  %v994_v57 = vld [vmem:[%s2942_s17 + $0x38] sm:$0xff]  ;;  %v1003_v63 = vld [vmem:[#allocation7] sm:$0xff] }
  0x61   : > { %646 = vmatpush.msrb.mxu0 %v504_v33  ;;  %724 = vmatpush.msrb.mxu2 %v3001_v31  ;;  %v788_v11 = vand.u32 4294901760, %v787_v5  ;;  %v3086_v19 = vsub.f32 %v429_v2, %v3073_v8  ;;  %v991_v33 = vld [vmem:[%s2942_s17 + $0x20] sm:$0xff]  ;;  %v1121_v48 = vsub.f32 %v997_v44, %v1059_v47  ;;  %v1061_v54 = vand.u32 4294901760, %v995_v52 }
  0x62   : > { %785 = vmatpush.msrb.mxu3 %v784_v61  ;;  %519 = vmatpush.msra.mxu1 %v518_v0  ;;  %v794_v12 = vand.u32 4294901760, %v793_v10  ;;  %v470_v14 = vsub.f32 %v3063_v3, %v3071_v7  ;;  %v1002_v59 = vmax.f32 %v994_v57, 0.0  ;;  %v1032_v0 = vsel %vm418_vm0, %v1003_v63, 0 }
  0x63   : > { %650 = vmatpush.msrb.mxu0 %v510_v34  ;;  %521 = vmatmul.f32.vlgmr.msra.gmra.mxu1 %v2971_v18  ;;  %v789_v13 = vsub.f32 %v787_v5, %v788_v11  ;;  %v3098_v26 = vand.u32 4294901760, %v3086_v19  ;;  %v1122_v49 = vand.u32 4294901760, %v1121_v48  ;;  %v1127_v55 = vsub.f32 %v995_v52, %v1061_v54 }
  0x64   : > { %726 = vmatpush.msrb.mxu2 %v725_v1  ;;  %685 = vmatpush.msrb.mxu1 %v2965_v15  ;;  %v795_v22 = vsub.f32 %v793_v10, %v794_v12  ;;  %v396_v15 = vld [vmem:[%s4453_s4 + $0x10] sm:$0xff]  ;;  %v471_v25 = vand.u32 4294901760, %v470_v14  ;;  %v3157_v61 = vand.u32 4294901760, %v1002_v59 }
  0x65   : > { %464 = vmatmul.f32.gmra.mxu0 %v3067_v6  ;;  %v790_v23 = vand.u32 4294901760, %v789_v13  ;;  %410 = vperm.xlu1 %2595, %v396_v15   ;;  %v1123_v51 = vsub.f32 %v1121_v48, %v1122_v49  ;;  %v1128_v56 = vand.u32 4294901760, %v1127_v55 }
  0x66   : > { %568 = vmatmul.f32.gmra.mxu2 %v3007_v35  ;;  %687 = vmatpush.msrb.mxu1 %v2967_v16  ;;  %v796_v24 = vand.u32 4294901760, %v795_v22  ;;  %v478_v16 = vsub.f32 %v3086_v19, %v3098_v26 }
  0x67   : > { %611 = vmatmul.f32.gmra.mxu3 %v3029_v45  ;;  %728 = vmatpush.msrb.mxu2 %v3065_v4  ;;  %v1129_v58 = vsub.f32 %v1127_v55, %v1128_v56 }
  0x68   : > { %654 = vmatpush.msrb.mxu0 %v516_v38  ;;  %791 = vmatpush.msrb.mxu3 %v790_v23 }
  0x69   : > { %689 = vmatpush.msrb.mxu1 %v2969_v17  ;;  %920 = vmatpush.msra.mxu2 %v776_v37  ;;  %v397_v17 = vld [vmem:[%s4453_s4 + $0x18] sm:$0xff]  ;;  %v999_v37 = vmax.f32 %v991_v33, 0.0  ;;  %v1130_v60 = vand.u32 4294901760, %v1129_v58 }
  0x6a   : > { %797 = vmatpush.msrb.mxu3 %v796_v24  ;;  %829 = vmatpush.msra.mxu0 %v2999_v30 }
  0x6b   : > { %691 = vmatpush.msrb.mxu1 %v2976_v20  ;;  %924 = vmatpush.msra.mxu2 %v782_v46  ;;  %v479_v20 = vand.u32 4294901760, %v478_v16 }
  0x6c   : > { %525 = vmatmul.f32.gmra.mxu1 %v2990_v27  ;;  %963 = vmatpush.msra.mxu3 %v2978_v21 }
  0x6d   : > { %873 = vmatpush.msra.mxu1 %v2978_v21  ;;  %472 = vmatmul.f32.gmra.mxu0 %v471_v25  ;;  %v993_v21 = vld [vmem:[%s2942_s17 + $0x30] sm:$0xff] }
  0x6e   : > { %573 = vmatmul.f32.gmra.mxu2 %v3063_v3  ;;  %832 = vmatpush.msra.mxu0 %v3016_v39  ;;  %v1001_v29 = vmax.f32 %v993_v21, 0.0  ;;  %v3139_v39 = vand.u32 4294901760, %v999_v37 }
  0x6f   : > { %617 = vmatmul.f32.gmra.mxu3 %v3071_v7  ;;  %875 = vmatpush.msra.mxu1 %v3001_v31 }
  0x70   : > { %965 = vmatpush.msra.mxu3 %v3001_v31  ;;  %928 = vmatpush.msra.mxu2 %v788_v11  ;;  %v3129_v30 = vand.u32 4294901760, %v1001_v29  ;;  %v1115_v40 = vsub.f32 %v999_v37, %v3139_v39  ;;  %v990_v11 = vld [vmem:[%s2942_s17 + $0x18] sm:$0xff] }
  0x71   : > { %415 = vperm.xlu1 %2595, %v397_v17   ;;  %835 = vmatpush.msra.mxu0 %v787_v5  ;;  %v998_v14 = vmax.f32 %v990_v11, 0.0 }
  0x72   : > { %967 = vmatpush.msra.mxu3 %v725_v1  ;;  %877 = vmatpush.msra.mxu1 %v725_v1  ;;  %v1109_v31 = vsub.f32 %v1001_v29, %v3129_v30  ;;  %v1116_v41 = vand.u32 4294901760, %v1115_v40 }
  0x73   : > { %932 = vmatpush.msra.mxu2 %v794_v12  ;;  %838 = vmatpush.msra.mxu0 %v793_v10  ;;  %v1009_v12 = vld [vmem:[%s4455_s6 + $0x10] sm:$0xff]  ;;  %v3198_v15 = vand.u32 4294901760, %v998_v14 }
  0x74   : > { %529 = vmatmul.f32.gmra.mxu1 %v3057_v62  ;;  %969 = vmatpush.msra.mxu3 %v3065_v4  ;;  %v1110_v32 = vand.u32 4294901760, %v1109_v31  ;;  %v1117_v43 = vsub.f32 %v1115_v40, %v1116_v41 }
  0x75   : > { %480 = vmatmul.f32.gmra.mxu0 %v479_v20  ;;  %879 = vmatpush.msra.mxu1 %v3065_v4  ;;  %v1399_v24 = vsub.f32 %v998_v14, %v3198_v15 }
  0x76   : > { %578 = vmatmul.f32.gmra.mxu2 %v3086_v19  ;;  %v1111_v34 = vsub.f32 %v1109_v31, %v1110_v32  ;;  %v1118_v46 = vand.u32 4294901760, %v1117_v43  ;;  %1023 = vperm.xlu0 %2594, %v1009_v12  }
  0x77   : > { %623 = vmatmul.f32.gmra.mxu3 %v3098_v26  ;;  %v1400_v21 = vand.u32 4294901760, %v1399_v24 }
  0x78   : > { %v1112_v38 = vand.u32 4294901760, %v1111_v34 }
  0x7c   : > { %533 = vmatmul.f32.gmra.mxu1 %v3073_v8 }
  0x7d   : > { %656 = vmatmul.f32.vlgmr.msrb.gmra.mxu0 %v2971_v18 }
  0x7e   : > { %734 = vmatmul.f32.vlgmr.msrb.gmra.mxu2 %v3042_v53  ;;  %1056 = vmatpush.msrb.mxu0 %v3129_v30  ;;  %v1124_v53 = vand.u32 4294901760, %v1123_v51 }
  0x7f   : > { %799 = vmatmul.f32.vlgmr.msrb.gmra.mxu3 %v2971_v18  ;;  %1163 = vmatpush.msrb.mxu2 %v1109_v31  ;;  %v1401_v31 = vsub.f32 %v1399_v24, %v1400_v21 }
  0x80   : > { %1207 = vmatpush.msrb.mxu3 %v3129_v30  ;;  %1058 = vmatpush.msrb.mxu0 %v3139_v39 }
  0x81   : > { %1166 = vmatpush.msrb.mxu2 %v1115_v40  ;;  %v1402_v37 = vand.u32 4294901760, %v1401_v31 }
  0x82   : > { %1209 = vmatpush.msrb.mxu3 %v3139_v39  ;;  %1060 = vmatpush.msrb.mxu0 %v1059_v47 }
  0x83   : > { %1169 = vmatpush.msrb.mxu2 %v1121_v48 }
  0x84   : > { %693 = vmatmul.f32.vlgmr.msrb.gmra.mxu1 %v2971_v18  ;;  %1211 = vmatpush.msrb.mxu3 %v1059_v47 }
  0x85   : > { %660 = vmatmul.f32.gmra.mxu0 %v2990_v27  ;;  %1113 = vmatpush.msrb.mxu1 %v1112_v38 }
  0x86   : > { %742 = vmatmul.f32.gmra.mxu2 %v3067_v6  ;;  %1062 = vmatpush.msrb.mxu0 %v1061_v54 }
  0x87   : > { %803 = vmatmul.f32.gmra.mxu3 %v2990_v27  ;;  %1119 = vmatpush.msrb.mxu1 %v1118_v46 }
  0x88   : > { %1213 = vmatpush.msrb.mxu3 %v1061_v54  ;;  %1172 = vmatpush.msrb.mxu2 %v1127_v55 }
  0x89   : > { %1125 = vmatpush.msrb.mxu1 %v1124_v53  ;;  %v1008_v53 = vld [vmem:[%s4455_s6 + $0x8] sm:$0xff] }
  0x8b   : > { %1131 = vmatpush.msrb.mxu1 %v1130_v60 }
  0x8c   : > { %697 = vmatmul.f32.gmra.mxu1 %v2990_v27 }
  0x8d   : > { %664 = vmatmul.f32.gmra.mxu0 %v3057_v62 }
  0x8e   : > { %750 = vmatmul.f32.gmra.mxu2 %v471_v25  ;;  %v988_v25 = vld [vmem:[%s2942_s17 + $0x8] sm:$0xff] }
  0x8f   : > { %807 = vmatmul.f32.gmra.mxu3 %v3057_v62  ;;  %v996_v16 = vmax.f32 %v988_v25, 0.0 }
  0x91   : > { %v1339_v29 = vand.u32 4294901760, %v996_v16 }
  0x94   : > { %701 = vmatmul.f32.gmra.mxu1 %v3057_v62 }
  0x95   : > { %668 = vmatmul.f32.gmra.mxu0 %v3073_v8 }
  0x96   : > { %758 = vmatmul.f32.gmra.mxu2 %v479_v20 }
  0x97   : > { %811 = vmatmul.f32.gmra.mxu3 %v3073_v8 }
  0x9c   : > { %705 = vmatmul.f32.gmra.mxu1 %v3073_v8 }
  0x9d   : > { %841 = vmatmul.f32.vlgmr.msra.gmra.mxu0 %v2993_v28  ;;  %v3162_v28 = vsub.f32 %v1002_v59, %v3157_v61 }
  0x9e   : > { %934 = vmatmul.f32.vlgmr.msra.gmra.mxu2 %v2971_v18  ;;  %1254 = vmatpush.msra.mxu0 %v1110_v32 }
  0x9f   : > { %971 = vmatmul.f32.vlgmr.msra.gmra.mxu3 %v2971_v18  ;;  %1334 = vmatpush.msra.mxu2 %v3157_v61  ;;  %v1388_v18 = vand.u32 4294901760, %v3162_v28 }
  0xa0   : > { %1258 = vmatpush.msra.mxu0 %v1116_v41 }
  0xa1   : > { %v1389_v1 = vsub.f32 %v3162_v28, %v1388_v18 }
  0xa2   : > { %1262 = vmatpush.msra.mxu0 %v1122_v49  ;;  %v1007_v49 = vld [vmem:[%s4455_s6] sm:$0xff] }
  0xa3   : > { %v1390_v4 = vand.u32 4294901760, %v1389_v1  ;;  %1013 = vperm.xlu2 %2596, %v1007_v49  }
  0xa4   : > { %883 = vmatmul.f32.vlgmr.msra.gmra.mxu1 %v3011_v36  ;;  %v992_v36 = vld [vmem:[%s2942_s17 + $0x28] sm:$0xff]  ;;  %1266 = vmatpush.msra.mxu0 %v1128_v56 }
  0xa5   : > { %846 = vmatmul.f32.gmra.mxu0 %v3007_v35  ;;  %1297 = vmatpush.msra.mxu1 %v3129_v30  ;;  %v1000_v2 = vmax.f32 %v992_v36, 0.0  ;;  %v3175_v35 = vand.u32 4294901760, %v1032_v0  ;;  %v1010_v30 = vld [vmem:[%s4455_s6 + $0x18] sm:$0xff] }
  0xa6   : > { %938 = vmatmul.f32.gmra.mxu2 %v2990_v27  ;;  %1391 = vmatpush.msra.mxu3 %v1390_v4 }
  0xa7   : > { %975 = vmatmul.f32.gmra.mxu3 %v2990_v27  ;;  %1299 = vmatpush.msra.mxu1 %v3139_v39  ;;  %v3177_v5 = vand.u32 4294901760, %v1000_v2  ;;  %v1004_v27 = vld [vmem:[#allocation7 + $0x8] sm:$0xff]  ;;  %v3185_v9 = vsub.f32 %v1032_v0, %v3175_v35 }
  0xa8   : > { %1028 = vperm.xlu1 %2595, %v1010_v30  }
  0xa9   : > { %1301 = vmatpush.msra.mxu1 %v1059_v47  ;;  %v1393_v6 = vsub.f32 %v1000_v2, %v3177_v5  ;;  %1336 = vmatpush.msra.mxu2 %v3177_v5 }
  0xab   : > { %1303 = vmatpush.msra.mxu1 %v1061_v54  ;;  %v1394_v10 = vand.u32 4294901760, %v1393_v6  ;;  %1338 = vmatpush.msra.mxu2 %v3198_v15 }
  0xac   : > { %889 = vmatmul.f32.gmra.mxu1 %v3029_v45  ;;  %v1035_v45 = vsel %vm418_vm0, %v1004_v27, 0  ;;  %1018 = vperm.xlu2 %2596, %v1008_v53  }
  0xad   : > { %851 = vmatmul.f32.gmra.mxu0 %v3063_v3  ;;  %v1395_v13 = vsub.f32 %v1393_v6, %v1394_v10  ;;  %v3194_v3 = vand.u32 4294901760, %v3185_v9  ;;  %v3196_v22 = vand.u32 4294901760, %v1035_v45  ;;  %1340 = vmatpush.msra.mxu2 %v1339_v29 }
  0xae   : > { %942 = vmatmul.f32.gmra.mxu2 %v3057_v62 }
  0xaf   : > { %979 = vmatmul.f32.gmra.mxu3 %v3057_v62  ;;  %v1396_v23 = vand.u32 4294901760, %v1395_v13  ;;  %v1005_v62 = vld [vmem:[#allocation7 + $0x10] sm:$0xff]  ;;  %v1066_v17 = vsub.f32 %v3185_v9, %v3194_v3  ;;  %v3209_v20 = vsub.f32 %v1035_v45, %v3196_v22 }
  0xb1   : > { %1397 = vmatpush.msra.mxu3 %v1396_v23  ;;  %v1067_v32 = vand.u32 4294901760, %v1066_v17  ;;  %v3217_v33 = vand.u32 4294901760, %v3209_v20 }
  0xb3   : > { %1403 = vmatpush.msra.mxu3 %v1402_v37  ;;  %v1074_v40 = vsub.f32 %v3209_v20, %v3217_v33 }
  0xb4   : > { %895 = vmatmul.f32.gmra.mxu1 %v3071_v7  ;;  %v1038_v7 = vsel %vm418_vm0, %v1005_v62, 0 }
  0xb5   : > { %856 = vmatmul.f32.gmra.mxu0 %v3086_v19  ;;  %v1405_v19 = vsub.f32 %v996_v16, %v1339_v29  ;;  %v3219_v34 = vand.u32 4294901760, %v1038_v7 }
  0xb6   : > { %946 = vmatmul.f32.gmra.mxu2 %v3073_v8 }
  0xb7   : > { %983 = vmatmul.f32.gmra.mxu3 %v3073_v8  ;;  %v1406_v38 = vand.u32 4294901760, %v1405_v19  ;;  %v1006_v8 = vld [vmem:[#allocation7 + $0x18] sm:$0xff]  ;;  %v3226_v41 = vsub.f32 %v1038_v7, %v3219_v34 }
  0xb8   : > { %v1041_v42 = vsel %vm418_vm0, %v1006_v8, 0 }
  0xb9   : > { %v1407_v39 = vsub.f32 %v1405_v19, %v1406_v38  ;;  %v3234_v44 = vand.u32 4294901760, %v3226_v41  ;;  %v3236_v46 = vand.u32 4294901760, %v1041_v42 }
  0xbb   : > { %v1408_v43 = vand.u32 4294901760, %v1407_v39  ;;  %v1082_v47 = vsub.f32 %v3226_v41, %v3234_v44  ;;  %v3246_v48 = vsub.f32 %v1041_v42, %v3236_v46 }
  0xbc   : > { %901 = vmatmul.f32.gmra.mxu1 %v3098_v26  ;;  %v1075_v26 = vand.u32 4294901760, %v1074_v40 }
  0xbd   : > { %1068 = vmatmul.f32.vlgmr.msrb.gmra.mxu0 %v1067_v32  ;;  %1409 = vmatpush.msra.mxu3 %v1408_v43  ;;  %v1083_v50 = vand.u32 4294901760, %v1082_v47  ;;  %v3255_v51 = vand.u32 4294901760, %v3246_v48 }
  0xbe   : > { %1175 = vmatmul.f32.vlgmr.msrb.gmra.mxu2 %v3185_v9  ;;  %1441 = vmatpush.msrb.mxu0 %v3162_v28 }
  0xbf   : > { %1217 = vmatmul.f32.vlgmr.msrb.gmra.mxu3 %v3194_v3  ;;  %1532 = vmatpush.msrb.mxu2 %v1388_v18  ;;  %v1090_v52 = vsub.f32 %v3246_v48, %v3255_v51 }
  0xc0   : > { %1575 = vmatpush.msrb.mxu3 %v3157_v61  ;;  %1444 = vmatpush.msrb.mxu0 %v1393_v6 }
  0xc1   : > { %1536 = vmatpush.msrb.mxu2 %v1394_v10  ;;  %v1091_v54 = vand.u32 4294901760, %v1090_v52 }
  0xc2   : > { %1577 = vmatpush.msrb.mxu3 %v3177_v5  ;;  %1447 = vmatpush.msrb.mxu0 %v1399_v24 }
  0xc3   : > { %1540 = vmatpush.msrb.mxu2 %v1400_v21 }
  0xc4   : > { %1133 = vmatmul.f32.vlgmr.msrb.gmra.mxu1 %v3175_v35  ;;  %1579 = vmatpush.msrb.mxu3 %v3198_v15 }
  0xc5   : > { %1485 = vmatpush.msrb.mxu1 %v3157_v61  ;;  %1076 = vmatmul.f32.gmra.mxu0 %v1075_v26  ;;  %v3276_v18 = vpop.permute.xlu0 %400 }
  0xc6   : > { %1180 = vmatmul.f32.gmra.mxu2 %v3209_v20  ;;  %1450 = vmatpush.msrb.mxu0 %v1405_v19 }
  0xc7   : > { %1223 = vmatmul.f32.gmra.mxu3 %v3217_v33  ;;  %1487 = vmatpush.msrb.mxu1 %v3177_v5 }
  0xc8   : > { %1544 = vmatpush.msrb.mxu2 %v1406_v38  ;;  %1581 = vmatpush.msrb.mxu3 %v1339_v29 }
  0xc9   : > { %1489 = vmatpush.msrb.mxu1 %v3198_v15 }
  0xcb   : > { %1491 = vmatpush.msrb.mxu1 %v1339_v29 }
  0xcc   : > { %1137 = vmatmul.f32.gmra.mxu1 %v3196_v22 }
  0xcd   : > { %1084 = vmatmul.f32.gmra.mxu0 %v1083_v50  ;;  %v3283_v27 = vpop.permute.xlu0 %405 }
  0xce   : > { %1185 = vmatmul.f32.gmra.mxu2 %v3226_v41 }
  0xcf   : > { %1229 = vmatmul.f32.gmra.mxu3 %v3234_v44 }
  0xd4   : > { %1141 = vmatmul.f32.gmra.mxu1 %v3219_v34 }
  0xd5   : > { %1092 = vmatmul.f32.gmra.mxu0 %v1091_v54 }
  0xd6   : > { %1190 = vmatmul.f32.gmra.mxu2 %v3246_v48 }
  0xd7   : > { %1235 = vmatmul.f32.gmra.mxu3 %v3255_v51  ;;  %v3288_v14 = vpop.permute.xlu1 %410 }
  0xda   : > { %v457_v55 = vpop.f32.mrf.mxu0 }
  0xdb   : > { %v458_v1 = vadd.f32 %v457_v55, %v3276_v18 }
  0xdc   : > { %1145 = vmatmul.f32.gmra.mxu1 %v3236_v46 }
  0xdd   : > { %1268 = vmatmul.f32.vlgmr.msra.gmra.mxu0 %v3175_v35 }
  0xde   : > { %1346 = vmatmul.f32.vlgmr.msra.gmra.mxu2 %v1067_v32 }
  0xdf   : > { %1411 = vmatmul.f32.vlgmr.msra.gmra.mxu3 %v3175_v35 }
  0xe0   : > { %v522_v56 = vpop.f32.mrf.mxu1 }
  0xe1   : > { %v564_v57 = vpop.f32.mrf.mxu2  ;;  %v523_v5 = vadd.f32 %v522_v56, %v458_v1 }
  0xe2   : > { %v606_v58 = vpop.f32.mrf.mxu3  ;;  %v465_v59 = vpop.f32.mrf.mxu0 }
  0xe3   : > { %v565_v45 = vadd.f32 %v564_v57, %v523_v5  ;;  %v466_v11 = vadd.f32 %v465_v59, %v3283_v27  ;;  %v3303_v30 = vpop.permute.xlu1 %415 }
  0xe4   : > { %1305 = vmatmul.f32.vlgmr.msra.gmra.mxu1 %v3175_v35 }
  0xe5   : > { %1272 = vmatmul.f32.gmra.mxu0 %v3196_v22  ;;  %v607_v23 = vadd.f32 %v606_v58, %v565_v45 }
  0xe6   : > { %1354 = vmatmul.f32.gmra.mxu2 %v1075_v26 }
  0xe7   : > { %1415 = vmatmul.f32.gmra.mxu3 %v3196_v22 }
  0xe9   : > { %v526_v60 = vpop.f32.mrf.mxu1  ;;  %v569_v61 = vpop.f32.mrf.mxu2 }
  0xea   : > { %v612_v63 = vpop.f32.mrf.mxu3  ;;  %v473_v28 = vpop.f32.mrf.mxu0  ;;  %v527_v15 = vadd.f32 %v526_v60, %v466_v11 }
  0xeb   : > { %v474_v17 = vadd.f32 %v473_v28, %v3288_v14 }
  0xec   : > { %1309 = vmatmul.f32.gmra.mxu1 %v3196_v22  ;;  %v570_v16 = vadd.f32 %v569_v61, %v527_v15 }
  0xed   : > { %1276 = vmatmul.f32.gmra.mxu0 %v3219_v34 }
  0xee   : > { %1362 = vmatmul.f32.gmra.mxu2 %v1083_v50 }
  0xef   : > { %1419 = vmatmul.f32.gmra.mxu3 %v3219_v34 }
  0xf1   : > { %v530_v0 = vpop.f32.mrf.mxu1  ;;  %v574_v36 = vpop.f32.mrf.mxu2 }
  0xf2   : > { %v618_v2 = vpop.f32.mrf.mxu3  ;;  %v481_v4 = vpop.f32.mrf.mxu0 }
  0xf3   : > { %v482_v37 = vadd.f32 %v481_v4, %v3303_v30 }
  0xf4   : > { %1313 = vmatmul.f32.gmra.mxu1 %v3219_v34 }
  0xf5   : > { %1280 = vmatmul.f32.gmra.mxu0 %v3236_v46 }
  0xf6   : > { %1370 = vmatmul.f32.gmra.mxu2 %v1091_v54 }
  0xf7   : > { %1423 = vmatmul.f32.gmra.mxu3 %v3236_v46 }
  0xf9   : > { %v534_v6 = vpop.f32.mrf.mxu1  ;;  %v579_v10 = vpop.f32.mrf.mxu2 }
  0xfa   : > { %v624_v12 = vpop.f32.mrf.mxu3  ;;  %v657_v13 = vpop.f32.mrf.mxu0 }
  0xfb   : > { %v658_v62 = vadd.f32 %v657_v13, %v607_v23 }
  0xfc   : > { %1317 = vmatmul.f32.gmra.mxu1 %v3236_v46 }
  0xfd   : > { %1453 = vmatmul.f32.vlgmr.msrb.gmra.mxu0 %v3185_v9  ;;  %v531_v9 = vadd.f32 %v530_v0, %v474_v17 }
  0xfe   : > { %1546 = vmatmul.f32.vlgmr.msrb.gmra.mxu2 %v3175_v35 }
  0xff   : > { %1583 = vmatmul.f32.vlgmr.msrb.gmra.mxu3 %v3175_v35  ;;  %v613_v35 = vadd.f32 %v612_v63, %v570_v16  ;;  %v575_v32 = vadd.f32 %v574_v36, %v531_v9 }
 0x101   : > { %v694_v24 = vpop.f32.mrf.mxu1  ;;  %v735_v25 = vpop.f32.mrf.mxu2 }
 0x102   : > { %v3294_v21 = vadd.f32 %v694_v24, %v658_v62  ;;  %v800_v7 = vpop.f32.mrf.mxu3  ;;  %v661_v29 = vpop.f32.mrf.mxu0  ;;  %v736_v53 = vadd.f32 %v735_v25, %v3276_v18 }
 0x103   : > { %v662_v31 = vadd.f32 %v661_v29, %v613_v35 }
 0x104   : > { %1495 = vmatmul.f32.vlgmr.msrb.gmra.mxu1 %v3194_v3  ;;  %1846 = vrot.lane.b32.xlu0 %v3294_v21, %s2769_s14 }
 0x105   : > { %1801 = vrot.lane.b32.xlu1 %v3294_v21, %s2770_s15  ;;  %1458 = vmatmul.f32.gmra.mxu0 %v3209_v20  ;;  %v619_v20 = vadd.f32 %v618_v2, %v575_v32 }
 0x106   : > { %1550 = vmatmul.f32.gmra.mxu2 %v3196_v22 }
 0x107   : > { %1587 = vmatmul.f32.gmra.mxu3 %v3196_v22  ;;  %v535_v22 = vadd.f32 %v534_v6, %v482_v37 }
 0x109   : > { %v698_v3 = vpop.f32.mrf.mxu1  ;;  %v743_v19 = vpop.f32.mrf.mxu2  ;;  %v580_v26 = vadd.f32 %v579_v10, %v535_v22 }
 0x10a   : > { %v3307_v38 = vadd.f32 %v698_v3, %v662_v31  ;;  %v804_v8 = vpop.f32.mrf.mxu3  ;;  %v665_v39 = vpop.f32.mrf.mxu0  ;;  %v744_v58 = vadd.f32 %v743_v19, %v3283_v27 }
 0x10b   : > { %v666_v40 = vadd.f32 %v665_v39, %v619_v20 }
 0x10c   : > { %1501 = vmatmul.f32.gmra.mxu1 %v3217_v33  ;;  %1803 = vrot.lane.b32.xlu2 %v3307_v38, %s2770_s15  ;;  %v805_v28 = vadd.f32 %v804_v8, %v744_v58 }
 0x10d   : > { %1848 = vrot.lane.b32.xlu1 %v3307_v38, %s2769_s14  ;;  %1463 = vmatmul.f32.gmra.mxu0 %v3226_v41  ;;  %v625_v41 = vadd.f32 %v624_v12, %v580_v26 }
 0x10e   : > { %1554 = vmatmul.f32.gmra.mxu2 %v3219_v34 }
 0x10f   : > { %1591 = vmatmul.f32.gmra.mxu3 %v3219_v34 }
 0x111   : > { %v702_v42 = vpop.f32.mrf.mxu1  ;;  %v751_v43 = vpop.f32.mrf.mxu2 }
 0x112   : > { %v3317_v47 = vadd.f32 %v702_v42, %v666_v40  ;;  %v808_v33 = vpop.f32.mrf.mxu3  ;;  %v669_v49 = vpop.f32.mrf.mxu0  ;;  %v752_v1 = vadd.f32 %v751_v43, %v3288_v14 }
 0x113   : > { %v670_v34 = vadd.f32 %v669_v49, %v625_v41  ;;  %v1014_v40 = vpop.permute.xlu2 %1013 }
 0x114   : > { %1507 = vmatmul.f32.gmra.mxu1 %v3234_v44  ;;  %1850 = vrot.lane.b32.xlu2 %v3317_v47, %s2769_s14  ;;  %v809_v6 = vadd.f32 %v808_v33, %v752_v1 }
 0x115   : > { %1805 = vrot.lane.b32.xlu0 %v3317_v47, %s2770_s15  ;;  %1468 = vmatmul.f32.gmra.mxu0 %v3246_v48  ;;  %v801_v48 = vadd.f32 %v800_v7, %v736_v53 }
 0x116   : > { %1558 = vmatmul.f32.gmra.mxu2 %v3236_v46 }
 0x117   : > { %1595 = vmatmul.f32.gmra.mxu3 %v3236_v46 }
 0x119   : > { %v706_v50 = vpop.f32.mrf.mxu1  ;;  %v759_v52 = vpop.f32.mrf.mxu2 }
 0x11a   : > { %v3328_v54 = vadd.f32 %v706_v50, %v670_v34  ;;  %v812_v44 = vpop.f32.mrf.mxu3  ;;  %v842_v55 = vpop.f32.mrf.mxu0  ;;  %v760_v13 = vadd.f32 %v759_v52, %v3303_v30 }
 0x11b   : > { %v843_v56 = vadd.f32 %v842_v55, %v801_v48  ;;  %v1019_v34 = vpop.permute.xlu2 %1018 }
 0x11c   : > { %1513 = vmatmul.f32.gmra.mxu1 %v3255_v51  ;;  %1807 = vrot.lane.b32.xlu1 %v3328_v54, %s2770_s15  ;;  %v813_v24 = vadd.f32 %v812_v44, %v760_v13 }
 0x11d   : > { %1852 = vrot.lane.b32.xlu0 %v3328_v54, %s2769_s14 }
 0x121   : > { %v884_v46 = vpop.f32.mrf.mxu1  ;;  %v935_v57 = vpop.f32.mrf.mxu2 }
 0x122   : > { %v885_v59 = vadd.f32 %v884_v46, %v843_v56  ;;  %v972_v60 = vpop.f32.mrf.mxu3  ;;  %v847_v61 = vpop.f32.mrf.mxu0 }
 0x123   : > { %v848_v51 = vadd.f32 %v847_v61, %v805_v28  ;;  %v1024_v28 = vpop.permute.xlu0 %1023 }
 0x124   : > { %v936_v63 = vadd.f32 %v935_v57, %v885_v59 }
 0x126   : > { %v3336_v18 = vadd.f32 %v972_v60, %v936_v63 }
 0x128   : > { %1809 = vrot.lane.b32.xlu2 %v3336_v18, %s2770_s15  ;;  %1854 = vrot.lane.b32.xlu1 %v3336_v18, %s2769_s14 }
 0x129   : > { %v890_v0 = vpop.f32.mrf.mxu1  ;;  %v939_v36 = vpop.f32.mrf.mxu2 }
 0x12a   : > { %v891_v2 = vadd.f32 %v890_v0, %v848_v51  ;;  %v976_v4 = vpop.f32.mrf.mxu3  ;;  %v852_v5 = vpop.f32.mrf.mxu0 }
 0x12b   : > { %v853_v45 = vadd.f32 %v852_v5, %v809_v6 }
 0x12c   : > { %v940_v27 = vadd.f32 %v939_v36, %v891_v2 }
 0x12e   : > { %v3343_v10 = vadd.f32 %v976_v4, %v940_v27 }
 0x130   : > { %1856 = vrot.lane.b32.xlu2 %v3343_v10, %s2769_s14  ;;  %1811 = vrot.lane.b32.xlu0 %v3343_v10, %s2770_s15 }
 0x131   : > { %v896_v11 = vpop.f32.mrf.mxu1  ;;  %v943_v12 = vpop.f32.mrf.mxu2 }
 0x132   : > { %v897_v23 = vadd.f32 %v896_v11, %v853_v45  ;;  %v980_v14 = vpop.f32.mrf.mxu3  ;;  %v857_v15 = vpop.f32.mrf.mxu0 }
 0x133   : > { %v858_v16 = vadd.f32 %v857_v15, %v813_v24  ;;  %v3370_v11 = vpop.permute.xlu1 %1028 }
 0x134   : > { %v944_v62 = vadd.f32 %v943_v12, %v897_v23 }
 0x136   : > { %v3350_v25 = vadd.f32 %v980_v14, %v944_v62 }
 0x138   : > { %1858 = vrot.lane.b32.xlu0 %v3350_v25, %s2769_s14  ;;  %1813 = vrot.lane.b32.xlu1 %v3350_v25, %s2770_s15 }
 0x139   : > { %v902_v17 = vpop.f32.mrf.mxu1  ;;  %v947_v7 = vpop.f32.mrf.mxu2 }
 0x13a   : > { %v903_v29 = vadd.f32 %v902_v17, %v858_v16  ;;  %v984_v35 = vpop.f32.mrf.mxu3  ;;  %v1069_v9 = vpop.f32.mrf.mxu0 }
 0x13b   : > { %v1070_v26 = vadd.f32 %v1069_v9, %v1014_v40 }
 0x13c   : > { %v948_v30 = vadd.f32 %v947_v7, %v903_v29 }
 0x13e   : > { %v3356_v31 = vadd.f32 %v984_v35, %v948_v30 }
 0x140   : > { %1815 = vrot.lane.b32.xlu2 %v3356_v31, %s2770_s15  ;;  %1860 = vrot.lane.b32.xlu1 %v3356_v31, %s2769_s14 }
 0x141   : > { %v1134_v3 = vpop.f32.mrf.mxu1  ;;  %v1176_v19 = vpop.f32.mrf.mxu2 }
 0x142   : > { %v1218_v32 = vpop.f32.mrf.mxu3  ;;  %v1077_v37 = vpop.f32.mrf.mxu0  ;;  %v1135_v41 = vadd.f32 %v1134_v3, %v1070_v26 }
 0x143   : > { %v1078_v44 = vadd.f32 %v1077_v37, %v1019_v34 }
 0x144   : > { %v1177_v53 = vadd.f32 %v1176_v19, %v1135_v41 }
 0x146   : > { %v1219_v56 = vadd.f32 %v1218_v32, %v1177_v53 }
 0x149   : > { %v1138_v8 = vpop.f32.mrf.mxu1  ;;  %v1181_v39 = vpop.f32.mrf.mxu2 }
 0x14a   : > { %v1224_v20 = vpop.f32.mrf.mxu3  ;;  %v1085_v22 = vpop.f32.mrf.mxu0  ;;  %v1139_v46 = vadd.f32 %v1138_v8, %v1078_v44 }
 0x14b   : > { %v1086_v0 = vadd.f32 %v1085_v22, %v1024_v28 }
 0x14c   : > { %v1182_v60 = vadd.f32 %v1181_v39, %v1139_v46 }
 0x14e   : > { %v1225_v36 = vadd.f32 %v1224_v20, %v1182_v60 }
 0x151   : > { %v1142_v42 = vpop.f32.mrf.mxu1  ;;  %v1186_v43 = vpop.f32.mrf.mxu2 }
 0x152   : > { %v1230_v33 = vpop.f32.mrf.mxu3  ;;  %v1093_v49 = vpop.f32.mrf.mxu0  ;;  %v1143_v1 = vadd.f32 %v1142_v42, %v1086_v0 }
 0x153   : > { %v1094_v13 = vadd.f32 %v1093_v49, %v3370_v11 }
 0x154   : > { %v1187_v27 = vadd.f32 %v1186_v43, %v1143_v1 }
 0x156   : > { %v1231_v23 = vadd.f32 %v1230_v33, %v1187_v27 }
 0x159   : > { %v1146_v50 = vpop.f32.mrf.mxu1  ;;  %v1191_v52 = vpop.f32.mrf.mxu2 }
 0x15a   : > { %v1236_v55 = vpop.f32.mrf.mxu3  ;;  %v1269_v48 = vpop.f32.mrf.mxu0  ;;  %v1147_v14 = vadd.f32 %v1146_v50, %v1094_v13 }
 0x15b   : > { %v1270_v57 = vadd.f32 %v1269_v48, %v1219_v56 }
 0x15c   : > { %v1192_v16 = vadd.f32 %v1191_v52, %v1147_v14 }
 0x15e   : > { %v1237_v35 = vadd.f32 %v1236_v55, %v1192_v16 }
 0x161   : > { %v1306_v58 = vpop.f32.mrf.mxu1  ;;  %v1347_v59 = vpop.f32.mrf.mxu2 }
 0x162   : > { %v3362_v61 = vadd.f32 %v1306_v58, %v1270_v57  ;;  %v1412_v63 = vpop.f32.mrf.mxu3  ;;  %v1273_v51 = vpop.f32.mrf.mxu0  ;;  %v1348_v19 = vadd.f32 %v1347_v59, %v1014_v40  ;;  %v1615_v58 = vlaneseq }
 0x163   : > { %v1274_v2 = vadd.f32 %v1273_v51, %v1225_v36 }
 0x164   : > { %1599 = vrot.lane.b32.xlu2 %v3362_v61, %s2770_s15  ;;  %1639 = vrot.lane.b32.xlu1 %v3362_v61, %s2769_s14  ;;  %v1413_v39 = vadd.f32 %v1412_v63, %v1348_v19  ;;  %v3403_v36 = vand.u32 127, %v1615_v58 }
 0x166   : > { %v3389_v20 = vpop.permute.xlu2 %1803  ;;  %vm1617_vm1 = vcmp.lt.s32.totalorder %v3403_v36, 1  ;;  %vm1655_vm2 = vcmp.lt.s32.totalorder %v3403_v36, 127  ;;  %vm1709_vm3 = vcmp.lt.s32.totalorder %v3403_v36, 16  ;;  %vm1747_vm4 = vcmp.lt.s32.totalorder %v3403_v36, 112 }
 0x169   : > { %v1310_v4 = vpop.f32.mrf.mxu1  ;;  %v1355_v5 = vpop.f32.mrf.mxu2 }
 0x16a   : > { %v3368_v6 = vadd.f32 %v1310_v4, %v1274_v2  ;;  %v1416_v45 = vpop.f32.mrf.mxu3  ;;  %v1277_v12 = vpop.f32.mrf.mxu0  ;;  %v1356_v33 = vadd.f32 %v1355_v5, %v1019_v34 }
 0x16b   : > { %v1278_v15 = vadd.f32 %v1277_v12, %v1231_v23 }
 0x16c   : > { %1641 = vrot.lane.b32.xlu2 %v3368_v6, %s2769_s14  ;;  %1601 = vrot.lane.b32.xlu0 %v3368_v6, %s2770_s15  ;;  %v1417_v52 = vadd.f32 %v1416_v45, %v1356_v33 }
 0x16e   : > { %v3395_v55 = vpop.permute.xlu2 %1850 }
 0x171   : > { %v1314_v62 = vpop.f32.mrf.mxu1  ;;  %v1363_v24 = vpop.f32.mrf.mxu2 }
 0x172   : > { %v3377_v17 = vadd.f32 %v1314_v62, %v1278_v15  ;;  %v1420_v7 = vpop.f32.mrf.mxu3  ;;  %v1281_v29 = vpop.f32.mrf.mxu0  ;;  %v1364_v34 = vadd.f32 %v1363_v24, %v1024_v28  ;;  %v2506_v28 = vld [vmem:[%s4449_s0 + $0x1] ss:$8 sm:$0x3] }
 0x173   : > { %v1282_v9 = vadd.f32 %v1281_v29, %v1237_v35  ;;  %v3420_v15 = vperm.slane %v2506_v28, 0 }
 0x174   : > { %1643 = vrot.lane.b32.xlu0 %v3377_v17, %s2769_s14  ;;  %1603 = vrot.lane.b32.xlu1 %v3377_v17, %s2770_s15  ;;  %v1421_v0 = vadd.f32 %v1420_v7, %v1364_v34 }
 0x175   : > { %4490 = vst [vmem:[#allocation17_spill] sm:$0xff] %v3420_v15 }
 0x176   : > { %v1847_v44 = vpop.permute.xlu0 %1846 }
 0x177   : > { %v3391_v22 = vpop.permute.xlu1 %1801 }
 0x179   : > { %v1318_v30 = vpop.f32.mrf.mxu1  ;;  %v1371_v3 = vpop.f32.mrf.mxu2 }
 0x17a   : > { %v3383_v32 = vadd.f32 %v1318_v30, %v1282_v9  ;;  %v1424_v37 = vpop.f32.mrf.mxu3  ;;  %v1454_v8 = vpop.f32.mrf.mxu0  ;;  %v1372_v12 = vadd.f32 %v1371_v3, %v3370_v11  ;;  %v2507_v11 = vld [vmem:[%s4449_s0 + $0x2] ss:$8 sm:$0x3] }
 0x17b   : > { %v1455_v42 = vadd.f32 %v1454_v8, %v1413_v39  ;;  %v3438_v19 = vperm.slane %v2507_v11, 0  ;;  %v3458_v34 = vperm.slane %v2507_v11, 1 }
 0x17c   : > { %1605 = vrot.lane.b32.xlu2 %v3383_v32, %s2770_s15  ;;  %1645 = vrot.lane.b32.xlu1 %v3383_v32, %s2769_s14  ;;  %v1425_v7 = vadd.f32 %v1424_v37, %v1372_v12 }
 0x17d   : > { %4491 = vst [vmem:[#allocation18_spill] sm:$0xff] %v3438_v19 }
 0x17e   : > { %4493 = vst [vmem:[#allocation20_spill] sm:$0xff] %v3458_v34 }
 0x17f   : > { %v3401_v57 = vpop.permute.xlu1 %1848 }
 0x181   : > { %v1496_v43 = vpop.f32.mrf.mxu1  ;;  %v1547_v26 = vpop.f32.mrf.mxu2 }
 0x182   : > { %v1497_v40 = vadd.f32 %v1496_v43, %v1455_v42  ;;  %v1584_v49 = vpop.f32.mrf.mxu3  ;;  %v1459_v41 = vpop.f32.mrf.mxu0 }
 0x183   : > { %v1460_v48 = vadd.f32 %v1459_v41, %v1417_v52  ;;  %v1810_v4 = vpop.permute.xlu2 %1809 }
 0x184   : > { %v1548_v50 = vadd.f32 %v1547_v26, %v1497_v40  ;;  %v1821_v24 = vsel %vm1617_vm1, %v1810_v4, %v3391_v22  ;;  %v3444_v40 = vperm.slane %v2506_v28, 1  ;;  %v1817_v41 = vsel %vm1617_vm1, %v3391_v22, %v1810_v4 }
 0x185   : > { %v1830_v35 = vmul.f32 %v3420_v15, %v1821_v24 }
 0x186   : > { %v3393_v53 = vadd.f32 %v1584_v49, %v1548_v50  ;;  %4492 = vst [vmem:[#allocation19_spill] sm:$0xff] %v3444_v40 }
 0x187   : > { %v3407_v2 = vpop.permute.xlu0 %1805  ;;  %v1838_v43 = vadd.f32 %v1830_v35, %v3294_v21 }
 0x188   : > { %1647 = vrot.lane.b32.xlu2 %v3393_v53, %s2769_s14  ;;  %1607 = vrot.lane.b32.xlu0 %v3393_v53, %s2770_s15 }
 0x189   : > { %v1502_v56 = vpop.f32.mrf.mxu1  ;;  %v1551_v46 = vpop.f32.mrf.mxu2 }
 0x18a   : > { %v1503_v59 = vadd.f32 %v1502_v56, %v1460_v48  ;;  %v1588_v60 = vpop.f32.mrf.mxu3  ;;  %v1464_v63 = vpop.f32.mrf.mxu0 }
 0x18b   : > { %v1465_v5 = vadd.f32 %v1464_v63, %v1421_v0  ;;  %v1857_v48 = vpop.permute.xlu2 %1856 }
 0x18c   : > { %v1552_v51 = vadd.f32 %v1551_v46, %v1503_v59  ;;  %v1831_v46 = vmul.f32 %v3444_v40, %v1817_v41  ;;  %v1867_v58 = vsel %vm1655_vm2, %v1857_v48, %v3401_v57 }
 0x18d   : > { %v1878_v0 = vmul.f32 %v3458_v34, %v1867_v58 }
 0x18e   : > { %v3405_v1 = vadd.f32 %v1588_v60, %v1552_v51  ;;  %v3418_v13 = vpop.permute.xlu1 %1807  ;;  %v1839_v51 = vadd.f32 %v1831_v46, %v3336_v18 }
 0x18f   : > { %v3435_v30 = vpop.permute.xlu0 %1852 }
 0x190   : > { %1649 = vrot.lane.b32.xlu0 %v3405_v1, %s2769_s14  ;;  %1609 = vrot.lane.b32.xlu1 %v3405_v1, %s2770_s15 }
 0x191   : > { %v1508_v27 = vpop.f32.mrf.mxu1  ;;  %v1555_v45 = vpop.f32.mrf.mxu2 }
 0x192   : > { %v1509_v23 = vadd.f32 %v1508_v27, %v1465_v5  ;;  %v1592_v14 = vpop.f32.mrf.mxu3  ;;  %v1469_v16 = vpop.f32.mrf.mxu0 }
 0x193   : > { %v1470_v9 = vadd.f32 %v1469_v16, %v1425_v7 }
 0x194   : > { %v1556_v62 = vadd.f32 %v1555_v45, %v1509_v23 }
 0x196   : > { %v3425_v29 = vadd.f32 %v1592_v14, %v1556_v62 }
 0x198   : > { %1611 = vrot.lane.b32.xlu2 %v3425_v29, %s2770_s15  ;;  %1651 = vrot.lane.b32.xlu1 %v3425_v29, %s2769_s14 }
 0x199   : > { %v1514_v3 = vpop.f32.mrf.mxu1  ;;  %v1559_v39 = vpop.f32.mrf.mxu2 }
 0x19a   : > { %v1515_v37 = vadd.f32 %v1514_v3, %v1470_v9  ;;  %v1855_v8 = vpop.permute.xlu1 %1854  ;;  %v1596_v33 = vpop.f32.mrf.mxu3 }
 0x19b   : > { %v1862_v42 = vsel %vm1655_vm2, %v1847_v44, %v1855_v8  ;;  %v1866_v56 = vsel %vm1655_vm2, %v1855_v8, %v1847_v44  ;;  %v1816_v24 = vpop.permute.xlu2 %1815 }
 0x19c   : > { %v1875_v26 = vmul.f32 %v3438_v19, %v1862_v42  ;;  %v1560_v49 = vadd.f32 %v1559_v39, %v1515_v37  ;;  %v1876_v44 = vmul.f32 %v3458_v34, %v1866_v56  ;;  %v1824_v35 = vsel %vm1617_vm1, %v1816_v24, %v3418_v13 }
 0x19d   : > { %v1836_v37 = vmul.f32 %v3420_v15, %v1824_v35 }
 0x19e   : > { %v3449_v50 = vadd.f32 %v1875_v26, %v1838_v43  ;;  %v3451_v52 = vadd.f32 %v1596_v33, %v1560_v49  ;;  %v3479_v28 = vadd.f32 %v1876_v44, %v1839_v51  ;;  %v1820_v26 = vsel %vm1617_vm1, %v3418_v13, %v1816_v24 }
 0x19f   : > { %v1844_v33 = vadd.f32 %v1836_v37, %v3328_v54  ;;  %v1837_v56 = vmul.f32 %v3444_v40, %v1820_v26 }
 0x1a0   : > { %1936 = vrot.lane.b32.xlu1 %v3449_v50, %s2771_s20  ;;  %1653 = vrot.lane.b32.xlu2 %v3451_v52, %s2769_s14 }
 0x1a1   : > { %1613 = vrot.lane.b32.xlu0 %v3451_v52, %s2770_s15  ;;  %v1845_v46 = vadd.f32 %v1837_v56, %v3356_v31 }
 0x1a2   : > { %v1812_v22 = vpop.permute.xlu0 %1811 }
 0x1a3   : > { %v1818_v59 = vsel %vm1617_vm1, %v3389_v20, %v1812_v22  ;;  %v1822_v60 = vsel %vm1617_vm1, %v1812_v22, %v3389_v20  ;;  %v1863_v20 = vsel %vm1655_vm2, %v3401_v57, %v1857_v48 }
 0x1a4   : > { %v1833_v63 = vmul.f32 %v3444_v40, %v1818_v59  ;;  %v1832_v5 = vmul.f32 %v3420_v15, %v1822_v60  ;;  %v1877_v57 = vmul.f32 %v3438_v19, %v1863_v20 }
 0x1a6   : > { %v1841_v4 = vadd.f32 %v1833_v63, %v3343_v10  ;;  %v1840_v23 = vadd.f32 %v1832_v5, %v3307_v38  ;;  %v2511_v5 = vld [vmem:[%s4449_s0 + $0x6] ss:$8 sm:$0x3] }
 0x1a8   : > { %v3481_v27 = vadd.f32 %v1878_v0, %v1841_v4  ;;  %1891 = vrot.lane.b32.xlu2 %v3449_v50, %s2772_s5  ;;  %v3506_v9 = vadd.f32 %v1877_v57, %v1840_v23  ;;  %v3568_v23 = vperm.slane %v2511_v5, 1 }
 0x1a9   : > { %1899 = vrot.lane.b32.xlu0 %v3479_v28, %s2772_s5 }
 0x1aa   : > { %v1859_v45 = vpop.permute.xlu0 %1858  ;;  %v1814_v12 = vpop.permute.xlu1 %1813  ;;  %1901 = vrot.lane.b32.xlu1 %v3481_v27, %s2772_s5  ;;  %4495 = vst [vmem:[#allocation22_spill] sm:$0xff] %v3568_v23 }
 0x1ab   : > { %v1864_v14 = vsel %vm1655_vm2, %v3395_v55, %v1859_v45  ;;  %v1823_v62 = vsel %vm1617_vm1, %v1814_v12, %v3407_v2  ;;  %v1819_v42 = vsel %vm1617_vm1, %v3407_v2, %v1814_v12  ;;  %v1868_v2 = vsel %vm1655_vm2, %v1859_v45, %v3395_v55  ;;  %v2510_v45 = vld [vmem:[%s4449_s0 + $0x5] ss:$8 sm:$0x3] }
 0x1ac   : > { %v1834_v16 = vmul.f32 %v3420_v15, %v1823_v62  ;;  %v1879_v7 = vmul.f32 %v3438_v19, %v1864_v14  ;;  %v1835_v49 = vmul.f32 %v3444_v40, %v1819_v42  ;;  %v1880_v22 = vmul.f32 %v3458_v34, %v1868_v2 }
 0x1ad   : > { %v3566_v12 = vperm.slane %v2511_v5, 0  ;;  %v3576_v57 = vperm.slane %v2510_v45, 1 }
 0x1ae   : > { %v1842_v11 = vadd.f32 %v1834_v16, %v3317_v47  ;;  %v1843_v13 = vadd.f32 %v1835_v49, %v3350_v25  ;;  %v3574_v16 = vperm.slane %v2510_v45, 0 }
 0x1af   : > { %4494 = vst [vmem:[#allocation21_spill] sm:$0xff] %v3566_v12 }
 0x1b0   : > { %v3508_v3 = vadd.f32 %v1879_v7, %v1842_v11  ;;  %1944 = vrot.lane.b32.xlu2 %v3479_v28, %s2771_s20  ;;  %v3550_v44 = vadd.f32 %v1880_v22, %v1843_v13  ;;  %4496 = vst [vmem:[#allocation23_spill] sm:$0xff] %v3574_v16 }
 0x1b1   : > { %1893 = vrot.lane.b32.xlu0 %v3506_v9, %s2772_s5  ;;  %4497 = vst [vmem:[#allocation24_spill] sm:$0xff] %v3576_v57 }
 0x1b2   : > { %v1861_v8 = vpop.permute.xlu1 %1860  ;;  %1895 = vrot.lane.b32.xlu1 %v3508_v3, %s2772_s5 }
 0x1b3   : > { %v1865_v39 = vsel %vm1655_vm2, %v3435_v30, %v1861_v8  ;;  %v1869_v41 = vsel %vm1655_vm2, %v1861_v8, %v3435_v30 }
 0x1b4   : > { %v1881_v43 = vmul.f32 %v3438_v19, %v1865_v39  ;;  %v1882_v30 = vmul.f32 %v3458_v34, %v1869_v41 }
 0x1b6   : > { %v3532_v48 = vadd.f32 %v1881_v43, %v1844_v33  ;;  %v3548_v58 = vadd.f32 %v1882_v30, %v1845_v46 }
 0x1b8   : > { %1938 = vrot.lane.b32.xlu2 %v3506_v9, %s2771_s20 }
 0x1b9   : > { %1940 = vrot.lane.b32.xlu0 %v3508_v3, %s2771_s20 }
 0x1ba   : > { %1942 = vrot.lane.b32.xlu1 %v3532_v48, %s2771_s20 }
 0x1be   : > { %v1600_v55 = vpop.permute.xlu2 %1599 }
 0x1c0   : > { %1903 = vrot.lane.b32.xlu2 %v3550_v44, %s2772_s5 }
 0x1c1   : > { %1905 = vrot.lane.b32.xlu0 %v3548_v58, %s2772_s5 }
 0x1c6   : > { %v1642_v59 = vpop.permute.xlu2 %1641 }
 0x1c8   : > { %1897 = vrot.lane.b32.xlu2 %v3532_v48, %s2772_s5 }
 0x1d6   : > { %v1640_v60 = vpop.permute.xlu1 %1639  ;;  %v3558_v51 = vpop.permute.xlu2 %1605 }
 0x1de   : > { %v1602_v63 = vpop.permute.xlu0 %1601 }
 0x1e2   : > { %v1648_v20 = vpop.permute.xlu2 %1647 }
 0x1e3   : > { %v1656_v14 = vsel %vm1655_vm2, %v1640_v60, %v1648_v20  ;;  %v1660_v62 = vsel %vm1655_vm2, %v1648_v20, %v1640_v60 }
 0x1e4   : > { %v1669_v37 = vadd.f32 %v3566_v12, %v1656_v14  ;;  %v1670_v8 = vadd.f32 %v3568_v23, %v1660_v62 }
 0x1e6   : > { %v1604_v0 = vpop.permute.xlu1 %1603  ;;  %v1644_v4 = vpop.permute.xlu0 %1643 }
 0x1ee   : > { %v1646_v24 = vpop.permute.xlu1 %1645 }
 0x1f2   : > { %v1612_v60 = vpop.permute.xlu2 %1611 }
 0x1fa   : > { %v1608_v7 = vpop.permute.xlu0 %1607 }
 0x1fb   : > { %v1618_v11 = vsel %vm1617_vm1, %v1600_v55, %v1608_v7  ;;  %v1622_v35 = vsel %vm1617_vm1, %v1608_v7, %v1600_v55 }
 0x1fc   : > { %v1631_v39 = vadd.f32 %v3574_v16, %v1622_v35  ;;  %v1632_v42 = vadd.f32 %v3576_v57, %v1618_v11  ;;  %v1620_v35 = vsel %vm1617_vm1, %v1604_v0, %v1612_v60 }
 0x1fe   : > { %v1677_v43 = vmax.f32 %v1631_v39, %v1669_v37  ;;  %v1678_v26 = vmax.f32 %v1632_v42, %v1670_v8  ;;  %v1636_v39 = vadd.f32 %v3576_v57, %v1620_v35 }
 0x200   : > { %v3587_v33 = vmax.f32 %v3362_v61, %v1677_v43  ;;  %v3590_v49 = vmax.f32 %v3393_v53, %v1678_v26 }
 0x202   : > { %v1650_v41 = vpop.permute.xlu0 %1649  ;;  %v1610_v56 = vpop.permute.xlu1 %1609  ;;  %1693 = vrot.lane.b32.xlu0 %v3587_v33, %s2772_s5  ;;  %1701 = vrot.lane.b32.xlu1 %v3590_v49, %s2772_s5 }
 0x203   : > { %v1657_v2 = vsel %vm1655_vm2, %v1642_v59, %v1650_v41  ;;  %v1661_v13 = vsel %vm1655_vm2, %v1650_v41, %v1642_v59  ;;  %v1619_v61 = vsel %vm1617_vm1, %v1602_v63, %v1610_v56  ;;  %v1623_v53 = vsel %vm1617_vm1, %v1610_v56, %v1602_v63  ;;  %1731 = vrot.lane.b32.xlu2 %v3587_v33, %s2771_s20 }
 0x204   : > { %v1671_v30 = vadd.f32 %v3566_v12, %v1657_v2  ;;  %v1672_v46 = vadd.f32 %v3568_v23, %v1661_v13  ;;  %v1633_v22 = vadd.f32 %v3574_v16, %v1623_v53  ;;  %v1634_v55 = vadd.f32 %v3576_v57, %v1619_v61 }
 0x205   : > { %v1624_v63 = vsel %vm1617_vm1, %v1612_v60, %v1604_v0 }
 0x206   : > { %v1679_v5 = vmax.f32 %v1633_v22, %v1671_v30  ;;  %v1680_v59 = vmax.f32 %v1634_v55, %v1672_v46 }
 0x208   : > { %v3611_v20 = vmax.f32 %v3368_v6, %v1679_v5  ;;  %v3614_v45 = vmax.f32 %v3405_v1, %v1680_v59  ;;  %v1635_v6 = vadd.f32 %v3574_v16, %v1624_v63 }
 0x20a   : > { %v1652_v14 = vpop.permute.xlu1 %1651  ;;  %1739 = vrot.lane.b32.xlu0 %v3590_v49, %s2771_s20  ;;  %1695 = vrot.lane.b32.xlu1 %v3611_v20, %s2772_s5 }
 0x20b   : > { %v1658_v62 = vsel %vm1655_vm2, %v1644_v4, %v1652_v14  ;;  %1703 = vrot.lane.b32.xlu2 %v3614_v45, %s2772_s5  ;;  %v1662_v7 = vsel %vm1655_vm2, %v1652_v14, %v1644_v4  ;;  %v1654_v4 = vpop.permute.xlu2 %1653 }
 0x20c   : > { %v1673_v1 = vadd.f32 %v3566_v12, %v1658_v62  ;;  %v1674_v37 = vadd.f32 %v3568_v23, %v1662_v7  ;;  %v1659_v26 = vsel %vm1655_vm2, %v1646_v24, %v1654_v4  ;;  %v1663_v41 = vsel %vm1655_vm2, %v1654_v4, %v1646_v24 }
 0x20d   : > { %v1675_v61 = vadd.f32 %v3566_v12, %v1659_v26  ;;  %v1676_v53 = vadd.f32 %v3568_v23, %v1663_v41 }
 0x20e   : > { %v1681_v11 = vmax.f32 %v1635_v6, %v1673_v1  ;;  %v1682_v43 = vmax.f32 %v1636_v39, %v1674_v37  ;;  %v2508_v39 = vld [vmem:[%s4449_s0 + $0x3] ss:$8 sm:$0x3] }
 0x210   : > { %v3634_v8 = vmax.f32 %v3377_v17, %v1681_v11  ;;  %v3656_v13 = vmax.f32 %v3425_v29, %v1682_v43  ;;  %v3712_v43 = vperm.slane %v2508_v39, 0 }
 0x212   : > { %1733 = vrot.lane.b32.xlu0 %v3611_v20, %s2771_s20  ;;  %1741 = vrot.lane.b32.xlu1 %v3614_v45, %s2771_s20 }
 0x213   : > { %v1614_v42 = vpop.permute.xlu0 %1613  ;;  %1697 = vrot.lane.b32.xlu2 %v3634_v8, %s2772_s5  ;;  %v1892_v5 = vpop.permute.xlu2 %1891 }
 0x214   : > { %v1621_v0 = vsel %vm1617_vm1, %v3558_v51, %v1614_v42  ;;  %v1625_v17 = vsel %vm1617_vm1, %v1614_v42, %v3558_v51  ;;  %v1937_v51 = vpop.permute.xlu1 %1936 }
 0x215   : > { %v1637_v56 = vadd.f32 %v3574_v16, %v1625_v17  ;;  %v1638_v2 = vadd.f32 %v3576_v57, %v1621_v0  ;;  %v3714_v0 = vperm.slane %v2508_v39, 1 }
 0x217   : > { %v1683_v24 = vmax.f32 %v1637_v56, %v1675_v61  ;;  %v1684_v46 = vmax.f32 %v1638_v2, %v1676_v53  ;;  %v2512_v56 = vld [vmem:[%s4449_s0 + $0x7] ss:$8 sm:$0x3]  ;;  %v2513_v2 = vld [vmem:[%s4449_s0 + $0x10] ss:$8 sm:$0x3] }
 0x218   : > { %v2509_v61 = vld [vmem:[%s4449_s0 + $0x4] ss:$8 sm:$0x3] }
 0x219   : > { %v3667_v29 = vmax.f32 %v3383_v32, %v1683_v24  ;;  %v3670_v22 = vmax.f32 %v3451_v52, %v1684_v46  ;;  %v3734_v24 = vperm.slane %v2512_v56, 0  ;;  %v3736_v46 = vperm.slane %v2512_v56, 1 }
 0x21a   : > { %1705 = vrot.lane.b32.xlu0 %v3656_v13, %s2772_s5  ;;  %1735 = vrot.lane.b32.xlu1 %v3634_v8, %s2771_s20  ;;  %v3744_v39 = vperm.slane %v2509_v61, 1 }
 0x21b   : > { %v1900_v30 = vpop.permute.xlu0 %1899  ;;  %1743 = vrot.lane.b32.xlu2 %v3656_v13, %s2771_s20  ;;  %v1945_v59 = vpop.permute.xlu2 %1944 }
 0x21c   : > { %v1902_v55 = vpop.permute.xlu1 %1901  ;;  %v1907_v17 = vsel %vm1709_vm3, %v1892_v5, %v1900_v30  ;;  %v1911_v26 = vsel %vm1709_vm3, %v1900_v30, %v1892_v5  ;;  %v3742_v5 = vperm.slane %v2509_v61, 0  ;;  %v1956_v56 = vsel %vm1747_vm4, %v1945_v59, %v1937_v51 }
 0x21d   : > { %v1920_v53 = vmul.f32 %v3712_v43, %v1911_v26  ;;  %v1921_v30 = vmul.f32 %v3714_v0, %v1907_v17  ;;  %v1952_v17 = vsel %vm1747_vm4, %v1937_v51, %v1945_v59 }
 0x21f   : > { %v1928_v23 = vadd.f32 %v1920_v53, %v3449_v50  ;;  %v1929_v61 = vadd.f32 %v1921_v30, %v3479_v28  ;;  %v1965_v28 = vmul.f32 %v3742_v5, %v1952_v17  ;;  %v1966_v53 = vmul.f32 %v3744_v39, %v1956_v56 }
 0x222   : > { %1699 = vrot.lane.b32.xlu0 %v3667_v29, %s2772_s5  ;;  %1707 = vrot.lane.b32.xlu1 %v3670_v22, %s2772_s5 }
 0x223   : > { %v1894_v60 = vpop.permute.xlu0 %1893  ;;  %1737 = vrot.lane.b32.xlu2 %v3667_v29, %s2771_s20  ;;  %v3695_v63 = vpop.permute.xlu2 %1938 }
 0x224   : > { %v3681_v32 = vsel %vm1709_vm3, %v1894_v60, %v1902_v55  ;;  %v3685_v52 = vsel %vm1709_vm3, %v1902_v55, %v1894_v60  ;;  %v3701_v6 = vpop.permute.xlu1 %1895  ;;  %v3738_v55 = vperm.slane %v2513_v2, 0  ;;  %v3740_v60 = vperm.slane %v2513_v2, 1 }
 0x22a   : > { %1745 = vrot.lane.b32.xlu0 %v3670_v22, %s2771_s20  ;;  %1948 = vrot.lane.b32.xlu1 %v3550_v44, %s2771_s20 }
 0x22b   : > { %1950 = vrot.lane.b32.xlu2 %v3548_v58, %s2771_s20  ;;  %v3697_v14 = vpop.permute.xlu2 %1903  ;;  %v3703_v1 = vpop.permute.xlu0 %1940 }
 0x22c   : > { %v3705_v11 = vpop.permute.xlu1 %1942 }
 0x232   : > { %1946 = vrot.lane.b32.xlu0 %v3481_v27, %s2771_s20 }
 0x233   : > { %v3699_v62 = vpop.permute.xlu2 %1897  ;;  %v3707_v35 = vpop.permute.xlu0 %1905 }
 0x25d   : > { %v1732_v7 = vpop.permute.xlu2 %1731 }
 0x265   : > { %v1704_v37 = vpop.permute.xlu2 %1703 }
 0x26d   : > { %v3720_v41 = vpop.permute.xlu2 %1697 }
 0x274   : > { %v1694_v42 = vpop.permute.xlu0 %1693  ;;  %v1702_v4 = vpop.permute.xlu1 %1701 }
 0x275   : > { %v1710_v57 = vsel %vm1709_vm3, %v1694_v42, %v1702_v4  ;;  %v1714_v26 = vsel %vm1709_vm3, %v1702_v4, %v1694_v42  ;;  %v357_v42 = vld [vmem:[%s4449_s0] ss:$8 sm:$0x3] }
 0x276   : > { %v1723_v4 = vadd.f32 %v3734_v24, %v1714_v26  ;;  %v1724_v51 = vadd.f32 %v3736_v46, %v1710_v57  ;;  %v3770_v40 = vperm.slane %v357_v42, 0  ;;  %v3772_v15 = vperm.slane %v357_v42, 1  ;;  %v1744_v26 = vpop.permute.xlu2 %1743 }
 0x27c   : > { %v1740_v16 = vpop.permute.xlu0 %1739  ;;  %v1696_v2 = vpop.permute.xlu1 %1695 }
 0x27d   : > { %v1748_v12 = vsel %vm1747_vm4, %v1732_v7, %v1740_v16  ;;  %v1752_v34 = vsel %vm1747_vm4, %v1740_v16, %v1732_v7  ;;  %v1973_v16 = vadd.f32 %v1965_v28, %v1928_v23  ;;  %v1974_v7 = vadd.f32 %v1966_v53, %v1929_v61 }
 0x27e   : > { %v1761_v59 = vadd.f32 %v3738_v55, %v1748_v12  ;;  %v1762_v50 = vadd.f32 %v3740_v60, %v1752_v34  ;;  %v1711_v34 = vsel %vm1709_vm3, %v1696_v2, %v1704_v37  ;;  %v1715_v17 = vsel %vm1709_vm3, %v1704_v37, %v1696_v2 }
 0x27f   : > { %v1986_v42 = vmul.f32 %v3770_v40, %v1973_v16  ;;  %v1738_v16 = vpop.permute.xlu2 %1737 }
 0x280   : > { %v1769_v30 = vmax.f32 %v1723_v4, %v1761_v59  ;;  %v1770_v19 = vmax.f32 %v1724_v51, %v1762_v50 }
 0x282   : > { %v3775_v57 = vmax.f32 %v3587_v33, %v1769_v30  ;;  %v3778_v12 = vmax.f32 %v3590_v49, %v1770_v19  ;;  %v1987_v19 = vmul.f32 %v3772_v15, %v1974_v7 }
 0x284   : > { %v3786_v23 = vadd.f32 %v3775_v57, %v3294_v21  ;;  %v3790_v56 = vadd.f32 %v3778_v12, %v3336_v18  ;;  %v1734_v61 = vpop.permute.xlu0 %1733  ;;  %v1742_v33 = vpop.permute.xlu1 %1741  ;;  %v1725_v21 = vadd.f32 %v3734_v24, %v1715_v17  ;;  %v1726_v18 = vadd.f32 %v3736_v46, %v1711_v34 }
 0x285   : > { %v1749_v49 = vsel %vm1747_vm4, %v1734_v61, %v1742_v33  ;;  %v1753_v37 = vsel %vm1747_vm4, %v1742_v33, %v1734_v61 }
 0x286   : > { %1793 = vst [vmem:[%s3798_s29] sm:$0xff] %v3786_v23  ;;  %v1763_v2 = vadd.f32 %v3738_v55, %v1749_v49  ;;  %v1764_v4 = vadd.f32 %v3740_v60, %v1753_v37  ;;  %v3809_v51 = vadd.f32 %v1987_v19, %v3790_v56  ;;  %v3812_v59 = vadd.f32 %v1986_v42, %v3786_v23 }
 0x287   : > { %1794 = vst [vmem:[%s3798_s29 + $0x8] sm:$0xff] %v3790_v56 }
 0x288   : > { %v1771_v50 = vmax.f32 %v1725_v21, %v1763_v2  ;;  %v1772_v28 = vmax.f32 %v1726_v18, %v1764_v4  ;;  %2018 = vrot.lane.b32.xlu1 %v3809_v51, %s2770_s15  ;;  %2003 = vst [vmem:[%s3798_s29 + $0x18] sm:$0xff] %v3809_v51  ;;  %2050 = vrot.lane.b32.xlu2 %v3812_v59, %s2769_s14 }
 0x289   : > { %2002 = vst [vmem:[%s3798_s29 + $0x10] sm:$0xff] %v3812_v59  ;;  %2010 = vrot.lane.b32.xlu0 %v3812_v59, %s2770_s15  ;;  %v1909_v18 = vsel %vm1709_vm3, %v3701_v6, %v3697_v14  ;;  %v1913_v2 = vsel %vm1709_vm3, %v3697_v14, %v3701_v6 }
 0x28a   : > { %v3821_v53 = vmax.f32 %v3611_v20, %v1771_v50  ;;  %v3824_v30 = vmax.f32 %v3614_v45, %v1772_v28  ;;  %v1914_v28 = vsel %vm1709_vm3, %v3707_v35, %v3699_v62  ;;  %v1924_v14 = vmul.f32 %v3712_v43, %v1913_v2 }
 0x28b   : > { %v1925_v6 = vmul.f32 %v3714_v0, %v1909_v18 }
 0x28c   : > { %v3832_v7 = vadd.f32 %v3821_v53, %v3307_v38  ;;  %v3836_v34 = vadd.f32 %v3824_v30, %v3343_v10  ;;  %v1706_v20 = vpop.permute.xlu0 %1705  ;;  %v1736_v17 = vpop.permute.xlu1 %1735 }
 0x28d   : > { %v1712_v45 = vsel %vm1709_vm3, %v3720_v41, %v1706_v20  ;;  %v1716_v61 = vsel %vm1709_vm3, %v1706_v20, %v3720_v41  ;;  %v1750_v33 = vsel %vm1747_vm4, %v1736_v17, %v1744_v26  ;;  %v1754_v38 = vsel %vm1747_vm4, %v1744_v26, %v1736_v17  ;;  %v1951_v20 = vpop.permute.xlu2 %1950 }
 0x28e   : > { %1795 = vst [vmem:[%s3798_s29 + $0x40] sm:$0xff] %v3832_v7  ;;  %v1727_v10 = vadd.f32 %v3734_v24, %v1716_v61  ;;  %v1728_v42 = vadd.f32 %v3736_v46, %v1712_v45  ;;  %v1765_v19 = vadd.f32 %v3738_v55, %v1750_v33  ;;  %v1766_v49 = vadd.f32 %v3740_v60, %v1754_v38 }
 0x28f   : > { %1796 = vst [vmem:[%s3798_s29 + $0x48] sm:$0xff] %v3836_v34  ;;  %v1955_v17 = vsel %vm1747_vm4, %v3705_v11, %v1951_v20  ;;  %v1959_v45 = vsel %vm1747_vm4, %v1951_v20, %v3705_v11  ;;  %v1932_v38 = vadd.f32 %v1924_v14, %v3508_v3  ;;  %v1922_v20 = vmul.f32 %v3712_v43, %v3685_v52 }
 0x290   : > { %v1773_v41 = vmax.f32 %v1727_v10, %v1765_v19  ;;  %v1774_v37 = vmax.f32 %v1728_v42, %v1766_v49  ;;  %v1971_v10 = vmul.f32 %v3742_v5, %v1955_v17  ;;  %v1972_v19 = vmul.f32 %v3744_v39, %v1959_v45 }
 0x291   : > { %2058 = vrot.lane.b32.xlu0 %v3809_v51, %s2769_s14 }
 0x292   : > { %v3857_v21 = vmax.f32 %v3634_v8, %v1773_v41  ;;  %v3860_v26 = vmax.f32 %v3656_v13, %v1774_v37 }
 0x294   : > { %v3874_v8 = vadd.f32 %v3857_v21, %v3317_v47  ;;  %v3878_v13 = vadd.f32 %v3860_v26, %v3350_v25  ;;  %v1700_v4 = vpop.permute.xlu0 %1699  ;;  %v1708_v50 = vpop.permute.xlu1 %1707  ;;  %v1910_v47 = vsel %vm1709_vm3, %v3699_v62, %v3707_v35  ;;  %v1926_v25 = vmul.f32 %v3712_v43, %v1914_v28 }
 0x295   : > { %v1713_v61 = vsel %vm1709_vm3, %v1700_v4, %v1708_v50  ;;  %v1717_v33 = vsel %vm1709_vm3, %v1708_v50, %v1700_v4  ;;  %v1933_v62 = vadd.f32 %v1925_v6, %v3550_v44  ;;  %v1927_v35 = vmul.f32 %v3714_v0, %v1910_v47 }
 0x296   : > { %1797 = vst [vmem:[%s3798_s29 + $0x80] sm:$0xff] %v3874_v8  ;;  %v1934_v42 = vadd.f32 %v1926_v25, %v3532_v48  ;;  %v1729_v11 = vadd.f32 %v3734_v24, %v1717_v33  ;;  %v1730_v49 = vadd.f32 %v3736_v46, %v1713_v61 }
 0x297   : > { %1798 = vst [vmem:[%s3798_s29 + $0x88] sm:$0xff] %v3878_v13 }
 0x298   : > { %v1979_v14 = vadd.f32 %v1971_v10, %v1934_v42 }
 0x29c   : > { %v1746_v41 = vpop.permute.xlu0 %1745  ;;  %v1949_v37 = vpop.permute.xlu1 %1948 }
 0x29d   : > { %v1751_v18 = vsel %vm1747_vm4, %v1738_v16, %v1746_v41  ;;  %v1755_v3 = vsel %vm1747_vm4, %v1746_v41, %v1738_v16  ;;  %v1954_v44 = vsel %vm1747_vm4, %v3703_v1, %v1949_v37  ;;  %v1958_v48 = vsel %vm1747_vm4, %v1949_v37, %v3703_v1 }
 0x29e   : > { %v1767_v2 = vadd.f32 %v3738_v55, %v1751_v18  ;;  %v1768_v4 = vadd.f32 %v3740_v60, %v1755_v3  ;;  %v1969_v50 = vmul.f32 %v3742_v5, %v1954_v44  ;;  %v1970_v28 = vmul.f32 %v3744_v39, %v1958_v48 }
 0x29f   : > { %v1935_v16 = vadd.f32 %v1927_v35, %v3548_v58  ;;  %v1923_v1 = vmul.f32 %v3714_v0, %v3681_v32  ;;  %v1930_v35 = vadd.f32 %v1922_v20, %v3506_v9 }
 0x2a0   : > { %v1775_v6 = vmax.f32 %v1729_v11, %v1767_v2  ;;  %v1776_v47 = vmax.f32 %v1730_v49, %v1768_v4  ;;  %v1977_v25 = vadd.f32 %v1969_v50, %v1932_v38  ;;  %v1978_v17 = vadd.f32 %v1970_v28, %v1933_v62  ;;  %v4498_v28 = vld [vmem:[#allocation17_spill] sm:$0xff] }
 0x2a1   : > { %v1980_v45 = vadd.f32 %v1972_v19, %v1935_v16  ;;  %v1992_v38 = vmul.f32 %v3770_v40, %v1979_v14  ;;  %v1931_v42 = vadd.f32 %v1923_v1, %v3481_v27  ;;  %v4499_v16 = vld [vmem:[#allocation19_spill] sm:$0xff] }
 0x2a2   : > { %v3933_v61 = vmax.f32 %v3667_v29, %v1775_v6  ;;  %v3936_v33 = vmax.f32 %v3670_v22, %v1776_v47  ;;  %v1990_v52 = vmul.f32 %v3770_v40, %v1977_v25  ;;  %v1991_v58 = vmul.f32 %v3772_v15, %v1978_v17 }
 0x2a3   : > { %v1993_v10 = vmul.f32 %v3772_v15, %v1980_v45 }
 0x2a4   : > { %v3944_v32 = vadd.f32 %v3933_v61, %v3328_v54  ;;  %v3948_v29 = vadd.f32 %v3936_v33, %v3356_v31  ;;  %v1947_v22 = vpop.permute.xlu0 %1946  ;;  %v3951_v62 = vadd.f32 %v1990_v52, %v3874_v8  ;;  %v3961_v31 = vadd.f32 %v1991_v58, %v3878_v13  ;;  %v4500_v52 = vld [vmem:[#allocation18_spill] sm:$0xff] }
 0x2a5   : > { %v1953_v9 = vsel %vm1747_vm4, %v3695_v63, %v1947_v22  ;;  %v1957_v54 = vsel %vm1747_vm4, %v1947_v22, %v3695_v63 }
 0x2a6   : > { %1799 = vst [vmem:[%s3798_s29 + $0xc0] sm:$0xff] %v3944_v32  ;;  %v1967_v19 = vmul.f32 %v3742_v5, %v1953_v9  ;;  %v1968_v11 = vmul.f32 %v3744_v39, %v1957_v54  ;;  %v3969_v49 = vadd.f32 %v1992_v38, %v3944_v32  ;;  %v3974_v63 = vadd.f32 %v1993_v10, %v3948_v29 }
 0x2a7   : > { %1800 = vst [vmem:[%s3798_s29 + $0xc8] sm:$0xff] %v3948_v29 }
 0x2a8   : > { %v1975_v41 = vadd.f32 %v1967_v19, %v1930_v35  ;;  %v1976_v37 = vadd.f32 %v1968_v11, %v1931_v42  ;;  %2006 = vst [vmem:[%s3798_s29 + $0x90] sm:$0xff] %v3951_v62  ;;  %v4501_v35 = vld [vmem:[#allocation20_spill] sm:$0xff] }
 0x2a9   : > { %2007 = vst [vmem:[%s3798_s29 + $0x98] sm:$0xff] %v3961_v31 }
 0x2aa   : > { %v1988_v27 = vmul.f32 %v3770_v40, %v1975_v41  ;;  %v1989_v18 = vmul.f32 %v3772_v15, %v1976_v37  ;;  %2008 = vst [vmem:[%s3798_s29 + $0xd0] sm:$0xff] %v3969_v49 }
 0x2ab   : > { %2009 = vst [vmem:[%s3798_s29 + $0xd8] sm:$0xff] %v3974_v63 }
 0x2ac   : > { %v1996_v3 = vadd.f32 %v1988_v27, %v3832_v7  ;;  %v1997_v44 = vadd.f32 %v1989_v18, %v3836_v34 }
 0x2ae   : > { %2012 = vrot.lane.b32.xlu1 %v1996_v3, %s2770_s15  ;;  %2004 = vst [vmem:[%s3798_s29 + $0x50] sm:$0xff] %v1996_v3  ;;  %2020 = vrot.lane.b32.xlu2 %v1997_v44, %s2770_s15 }
 0x2af   : > { %2005 = vst [vmem:[%s3798_s29 + $0x58] sm:$0xff] %v1997_v44  ;;  %2052 = vrot.lane.b32.xlu0 %v1996_v3, %s2769_s14 }
 0x2b6   : > { %2060 = vrot.lane.b32.xlu1 %v1997_v44, %s2769_s14  ;;  %2014 = vrot.lane.b32.xlu2 %v3951_v62, %s2770_s15 }
 0x2b7   : > { %2022 = vrot.lane.b32.xlu0 %v3961_v31, %s2770_s15 }
 0x2be   : > { %2054 = vrot.lane.b32.xlu1 %v3951_v62, %s2769_s14  ;;  %2056 = vrot.lane.b32.xlu2 %v3969_v49, %s2769_s14 }
 0x2bf   : > { %2016 = vrot.lane.b32.xlu0 %v3969_v49, %s2770_s15 }
 0x2c6   : > { %2024 = vrot.lane.b32.xlu1 %v3974_v63, %s2770_s15  ;;  %2062 = vrot.lane.b32.xlu2 %v3961_v31, %s2769_s14 }
 0x2c7   : > { %2064 = vrot.lane.b32.xlu0 %v3974_v63, %s2769_s14 }
 0x2e2   : > { %v2051_v6 = vpop.permute.xlu2 %2050 }
 0x2fa   : > { %v2019_v48 = vpop.permute.xlu1 %2018 }
 0x2fb   : > { %v2011_v2 = vpop.permute.xlu0 %2010 }
 0x2fc   : > { %v2026_v4 = vsel %vm1617_vm1, %v2011_v2, %v2019_v48  ;;  %v2030_v50 = vsel %vm1617_vm1, %v2019_v48, %v2011_v2 }
 0x2fd   : > { %v2034_v20 = vmul.f32 %v2030_v50, %v4498_v28  ;;  %v2035_v14 = vmul.f32 %v2026_v4, %v4499_v16 }
 0x2ff   : > { %v2042_v1 = vadd.f32 %v2034_v20, %v3812_v59  ;;  %v2043_v45 = vadd.f32 %v2035_v14, %v3809_v51 }
 0x303   : > { %v2059_v47 = vpop.permute.xlu0 %2058 }
 0x304   : > { %v2066_v25 = vsel %vm1655_vm2, %v2051_v6, %v2059_v47  ;;  %v2070_v17 = vsel %vm1655_vm2, %v2059_v47, %v2051_v6 }
 0x305   : > { %v2074_v58 = vmul.f32 %v2066_v25, %v4500_v52  ;;  %v2075_v38 = vmul.f32 %v2070_v17, %v4501_v35 }
 0x307   : > { %v4024_v22 = vadd.f32 %v2075_v38, %v2043_v45  ;;  %v4026_v10 = vadd.f32 %v2074_v58, %v2042_v1 }
 0x308   : > { %v2021_v59 = vpop.permute.xlu2 %2020 }
 0x309   : > { %2098 = vrot.lane.b32.xlu2 %v4024_v22, %s2772_s5  ;;  %2130 = vrot.lane.b32.xlu0 %v4026_v10, %s2771_s20 }
 0x30a   : > { %2090 = vrot.lane.b32.xlu1 %v4026_v10, %s2772_s5 }
 0x310   : > { %v2015_v51 = vpop.permute.xlu2 %2014 }
 0x312   : > { %2138 = vrot.lane.b32.xlu1 %v4024_v22, %s2771_s20 }
 0x318   : > { %v2057_v11 = vpop.permute.xlu2 %2056 }
 0x320   : > { %v2013_v9 = vpop.permute.xlu1 %2012 }
 0x321   : > { %v2053_v54 = vpop.permute.xlu0 %2052  ;;  %v2027_v42 = vsel %vm1617_vm1, %v2013_v9, %v2021_v59  ;;  %v2031_v19 = vsel %vm1617_vm1, %v2021_v59, %v2013_v9 }
 0x322   : > { %v2036_v41 = vmul.f32 %v2031_v19, %v4498_v28  ;;  %v2037_v37 = vmul.f32 %v2027_v42, %v4499_v16 }
 0x324   : > { %v2044_v4 = vadd.f32 %v2036_v41, %v1996_v3  ;;  %v2045_v50 = vadd.f32 %v2037_v37, %v1997_v44  ;;  %v2063_v3 = vpop.permute.xlu2 %2062 }
 0x328   : > { %v2061_v27 = vpop.permute.xlu1 %2060 }
 0x329   : > { %v2067_v18 = vsel %vm1655_vm2, %v2053_v54, %v2061_v27  ;;  %v2071_v48 = vsel %vm1655_vm2, %v2061_v27, %v2053_v54  ;;  %v2023_v2 = vpop.permute.xlu0 %2022 }
 0x32a   : > { %v2076_v20 = vmul.f32 %v2067_v18, %v4500_v52  ;;  %v2077_v14 = vmul.f32 %v2071_v48, %v4501_v35  ;;  %v2028_v6 = vsel %vm1617_vm1, %v2015_v51, %v2023_v2  ;;  %v2032_v47 = vsel %vm1617_vm1, %v2023_v2, %v2015_v51 }
 0x32b   : > { %v2038_v1 = vmul.f32 %v2032_v47, %v4498_v28  ;;  %v2039_v45 = vmul.f32 %v2028_v6, %v4499_v16 }
 0x32c   : > { %v4052_v25 = vadd.f32 %v2077_v14, %v2045_v50  ;;  %v4054_v17 = vadd.f32 %v2076_v20, %v2044_v4 }
 0x32d   : > { %v2046_v51 = vadd.f32 %v2038_v1, %v3951_v62  ;;  %v2047_v9 = vadd.f32 %v2039_v45, %v3961_v31 }
 0x32e   : > { %2100 = vrot.lane.b32.xlu0 %v4052_v25, %s2772_s5  ;;  %2132 = vrot.lane.b32.xlu1 %v4054_v17, %s2771_s20 }
 0x32f   : > { %2092 = vrot.lane.b32.xlu2 %v4054_v17, %s2772_s5 }
 0x330   : > { %v2055_v44 = vpop.permute.xlu1 %2054 }
 0x331   : > { %v2068_v58 = vsel %vm1655_vm2, %v2055_v44, %v2063_v3  ;;  %v2072_v38 = vsel %vm1655_vm2, %v2063_v3, %v2055_v44  ;;  %v2017_v59 = vpop.permute.xlu0 %2016 }
 0x332   : > { %v2078_v54 = vmul.f32 %v2068_v58, %v4500_v52  ;;  %v2079_v42 = vmul.f32 %v2072_v38, %v4501_v35 }
 0x334   : > { %v4072_v19 = vadd.f32 %v2078_v54, %v2046_v51  ;;  %v4074_v41 = vadd.f32 %v2079_v42, %v2047_v9 }
 0x336   : > { %2094 = vrot.lane.b32.xlu0 %v4072_v19, %s2772_s5  ;;  %2102 = vrot.lane.b32.xlu1 %v4074_v41, %s2772_s5 }
 0x337   : > { %2134 = vrot.lane.b32.xlu2 %v4072_v19, %s2771_s20 }
 0x338   : > { %v2025_v62 = vpop.permute.xlu1 %2024 }
 0x339   : > { %v2029_v31 = vsel %vm1617_vm1, %v2017_v59, %v2025_v62  ;;  %v2033_v37 = vsel %vm1617_vm1, %v2025_v62, %v2017_v59  ;;  %v2065_v27 = vpop.permute.xlu0 %2064 }
 0x33a   : > { %v2040_v18 = vmul.f32 %v2033_v37, %v4498_v28  ;;  %v2041_v48 = vmul.f32 %v2029_v31, %v4499_v16  ;;  %v2069_v2 = vsel %vm1655_vm2, %v2057_v11, %v2065_v27  ;;  %v2073_v4 = vsel %vm1655_vm2, %v2065_v27, %v2057_v11 }
 0x33b   : > { %v2080_v14 = vmul.f32 %v2069_v2, %v4500_v52  ;;  %v2081_v6 = vmul.f32 %v2073_v4, %v4501_v35 }
 0x33c   : > { %v2048_v50 = vadd.f32 %v2040_v18, %v3969_v49  ;;  %v2049_v20 = vadd.f32 %v2041_v48, %v3974_v63 }
 0x33e   : > { %v4096_v47 = vadd.f32 %v2081_v6, %v2049_v20  ;;  %v4098_v1 = vadd.f32 %v2080_v14, %v2048_v50 }
 0x340   : > { %2104 = vrot.lane.b32.xlu2 %v4096_v47, %s2772_s5  ;;  %2136 = vrot.lane.b32.xlu0 %v4098_v1, %s2771_s20 }
 0x341   : > { %2096 = vrot.lane.b32.xlu1 %v4098_v1, %s2772_s5 }
 0x348   : > { %2140 = vrot.lane.b32.xlu2 %v4052_v25, %s2771_s20  ;;  %2142 = vrot.lane.b32.xlu0 %v4074_v41, %s2771_s20 }
 0x349   : > { %2144 = vrot.lane.b32.xlu1 %v4096_v47, %s2771_s20 }
 0x363   : > { %v2099_v63 = vpop.permute.xlu2 %2098 }
 0x37b   : > { %v2131_v11 = vpop.permute.xlu0 %2130 }
 0x37c   : > { %v2091_v49 = vpop.permute.xlu1 %2090 }
 0x37d   : > { %v2106_v28 = vsel %vm1709_vm3, %v2091_v49, %v2099_v63  ;;  %v2110_v16 = vsel %vm1709_vm3, %v2099_v63, %v2091_v49 }
 0x37e   : > { %v2114_v52 = vmul.f32 %v2110_v16, %v3712_v43  ;;  %v2115_v35 = vmul.f32 %v2106_v28, %v3714_v0 }
 0x380   : > { %v2122_v58 = vadd.f32 %v2114_v52, %v4026_v10  ;;  %v2123_v38 = vadd.f32 %v2115_v35, %v4024_v22 }
 0x384   : > { %v2139_v45 = vpop.permute.xlu1 %2138 }
 0x385   : > { %v2146_v3 = vsel %vm1747_vm4, %v2131_v11, %v2139_v45  ;;  %v2150_v44 = vsel %vm1747_vm4, %v2139_v45, %v2131_v11 }
 0x386   : > { %v2154_v59 = vmul.f32 %v2146_v3, %v3742_v5  ;;  %v2155_v51 = vmul.f32 %v2150_v44, %v3744_v39 }
 0x388   : > { %v2162_v9 = vadd.f32 %v2154_v59, %v2122_v58  ;;  %v2163_v54 = vadd.f32 %v2155_v51, %v2123_v38 }
 0x389   : > { %v2093_v42 = vpop.permute.xlu2 %2092 }
 0x38a   : > { %v2170_v62 = vmul.f32 %v2162_v9, %v3770_v40  ;;  %v2171_v31 = vmul.f32 %v2163_v54, %v3772_v15 }
 0x38c   : > { %v4129_v37 = vadd.f32 %v2171_v31, %v3778_v12  ;;  %v4132_v27 = vadd.f32 %v2170_v62, %v3775_v57 }
 0x38e   : > { %2202 = vrot.lane.b32.xlu0 %v4129_v37, %s2770_s15  ;;  %2187 = vst [vmem:[%s3798_s29 + $0x28] sm:$0xff] %v4129_v37  ;;  %2226 = vrot.lane.b32.xlu1 %v4132_v27, %s2769_s14 }
 0x38f   : > { %2186 = vst [vmem:[%s3798_s29 + $0x20] sm:$0xff] %v4132_v27  ;;  %2194 = vrot.lane.b32.xlu2 %v4132_v27, %s2770_s15 }
 0x391   : > { %v2135_v22 = vpop.permute.xlu2 %2134 }
 0x397   : > { %2234 = vrot.lane.b32.xlu2 %v4129_v37, %s2769_s14 }
 0x39a   : > { %v2105_v12 = vpop.permute.xlu2 %2104 }
 0x3a0   : > { %v2101_v57 = vpop.permute.xlu0 %2100  ;;  %v2133_v10 = vpop.permute.xlu1 %2132 }
 0x3a1   : > { %v2107_v18 = vsel %vm1709_vm3, %v2093_v42, %v2101_v57  ;;  %v2111_v48 = vsel %vm1709_vm3, %v2101_v57, %v2093_v42 }
 0x3a2   : > { %v2116_v2 = vmul.f32 %v2111_v48, %v3712_v43  ;;  %v2117_v4 = vmul.f32 %v2107_v18, %v3714_v0  ;;  %v2141_v50 = vpop.permute.xlu2 %2140 }
 0x3a3   : > { %v2147_v20 = vsel %vm1747_vm4, %v2133_v10, %v2141_v50  ;;  %v2151_v14 = vsel %vm1747_vm4, %v2141_v50, %v2133_v10 }
 0x3a4   : > { %v2124_v6 = vadd.f32 %v2116_v2, %v4054_v17  ;;  %v2125_v49 = vadd.f32 %v2117_v4, %v4052_v25  ;;  %v2156_v63 = vmul.f32 %v2147_v20, %v3742_v5  ;;  %v2157_v28 = vmul.f32 %v2151_v14, %v3744_v39 }
 0x3a6   : > { %v2164_v16 = vadd.f32 %v2156_v63, %v2124_v6  ;;  %v2165_v52 = vadd.f32 %v2157_v28, %v2125_v49 }
 0x3a8   : > { %v2172_v35 = vmul.f32 %v2164_v16, %v3770_v40  ;;  %v2173_v11 = vmul.f32 %v2165_v52, %v3772_v15  ;;  %v2095_v45 = vpop.permute.xlu0 %2094  ;;  %v2103_v17 = vpop.permute.xlu1 %2102 }
 0x3a9   : > { %v2112_v58 = vsel %vm1709_vm3, %v2103_v17, %v2095_v45 }
 0x3aa   : > { %v4163_v3 = vadd.f32 %v2172_v35, %v3821_v53  ;;  %v4166_v44 = vadd.f32 %v2173_v11, %v3824_v30  ;;  %v2108_v30 = vsel %vm1709_vm3, %v2095_v45, %v2103_v17  ;;  %v2118_v51 = vmul.f32 %v2112_v58, %v3712_v43  ;;  %v4502_v11 = vld [vmem:[#allocation21_spill] sm:$0xff]  ;;  %v4503_v17 = vld [vmem:[#allocation22_spill] sm:$0xff]  ;;  %v4505_v58 = vld [vmem:[#allocation24_spill] sm:$0xff] }
 0x3ab   : > { %v2119_v9 = vmul.f32 %v2108_v30, %v3714_v0 }
 0x3ac   : > { %2228 = vrot.lane.b32.xlu2 %v4163_v3, %s2769_s14  ;;  %2188 = vst [vmem:[%s3798_s29 + $0x60] sm:$0xff] %v4163_v3  ;;  %2196 = vrot.lane.b32.xlu0 %v4163_v3, %s2770_s15  ;;  %v2126_v31 = vadd.f32 %v2118_v51, %v4072_v19 }
 0x3ad   : > { %2204 = vrot.lane.b32.xlu1 %v4166_v44, %s2770_s15  ;;  %2189 = vst [vmem:[%s3798_s29 + $0x68] sm:$0xff] %v4166_v44  ;;  %v2127_v57 = vadd.f32 %v2119_v9, %v4074_v41 }
 0x3b2   : > { %v2137_v25 = vpop.permute.xlu0 %2136 }
 0x3b3   : > { %v2097_v53 = vpop.permute.xlu1 %2096 }
 0x3b4   : > { %2236 = vrot.lane.b32.xlu0 %v4166_v44, %s2769_s14  ;;  %v2109_v38 = vsel %vm1709_vm3, %v2097_v53, %v2105_v12  ;;  %v2113_v59 = vsel %vm1709_vm3, %v2105_v12, %v2097_v53  ;;  %v4504_v53 = vld [vmem:[#allocation23_spill] sm:$0xff] }
 0x3b5   : > { %v2120_v54 = vmul.f32 %v2113_v59, %v3712_v43  ;;  %v2121_v42 = vmul.f32 %v2109_v38, %v3714_v0 }
 0x3b7   : > { %v2128_v19 = vadd.f32 %v2120_v54, %v4098_v1  ;;  %v2129_v41 = vadd.f32 %v2121_v42, %v4096_v47 }
 0x3ba   : > { %v2143_v62 = vpop.permute.xlu0 %2142 }
 0x3bb   : > { %v2145_v10 = vpop.permute.xlu1 %2144  ;;  %v2148_v18 = vsel %vm1747_vm4, %v2135_v22, %v2143_v62  ;;  %v2152_v12 = vsel %vm1747_vm4, %v2143_v62, %v2135_v22 }
 0x3bc   : > { %v2149_v48 = vsel %vm1747_vm4, %v2137_v25, %v2145_v10  ;;  %v2153_v43 = vsel %vm1747_vm4, %v2145_v10, %v2137_v25  ;;  %v2158_v0 = vmul.f32 %v2148_v18, %v3742_v5  ;;  %v2159_v2 = vmul.f32 %v2152_v12, %v3744_v39 }
 0x3bd   : > { %v2160_v4 = vmul.f32 %v2149_v48, %v3742_v5  ;;  %v2161_v50 = vmul.f32 %v2153_v43, %v3744_v39 }
 0x3be   : > { %v2166_v22 = vadd.f32 %v2158_v0, %v2126_v31  ;;  %v2167_v20 = vadd.f32 %v2159_v2, %v2127_v57 }
 0x3bf   : > { %v2168_v14 = vadd.f32 %v2160_v4, %v2128_v19  ;;  %v2169_v6 = vadd.f32 %v2161_v50, %v2129_v41 }
 0x3c0   : > { %v2174_v49 = vmul.f32 %v2166_v22, %v3770_v40  ;;  %v2175_v63 = vmul.f32 %v2167_v20, %v3772_v15 }
 0x3c1   : > { %v2176_v1 = vmul.f32 %v2168_v14, %v3770_v40  ;;  %v2177_v47 = vmul.f32 %v2169_v6, %v3772_v15 }
 0x3c2   : > { %v4213_v28 = vadd.f32 %v2175_v63, %v3860_v26  ;;  %v4216_v5 = vadd.f32 %v2174_v49, %v3857_v21 }
 0x3c3   : > { %v4219_v39 = vadd.f32 %v2176_v1, %v3933_v61  ;;  %v4222_v16 = vadd.f32 %v2177_v47, %v3936_v33 }
 0x3c4   : > { %2206 = vrot.lane.b32.xlu2 %v4213_v28, %s2770_s15  ;;  %2191 = vst [vmem:[%s3798_s29 + $0xa8] sm:$0xff] %v4213_v28  ;;  %2230 = vrot.lane.b32.xlu0 %v4216_v5, %s2769_s14 }
 0x3c5   : > { %2190 = vst [vmem:[%s3798_s29 + $0xa0] sm:$0xff] %v4216_v5  ;;  %2198 = vrot.lane.b32.xlu1 %v4216_v5, %s2770_s15 }
 0x3c6   : > { %2192 = vst [vmem:[%s3798_s29 + $0xe0] sm:$0xff] %v4219_v39 }
 0x3c7   : > { %2193 = vst [vmem:[%s3798_s29 + $0xe8] sm:$0xff] %v4222_v16 }
 0x3cc   : > { %2200 = vrot.lane.b32.xlu2 %v4219_v39, %s2770_s15  ;;  %2208 = vrot.lane.b32.xlu0 %v4222_v16, %s2770_s15 }
 0x3cd   : > { %2232 = vrot.lane.b32.xlu1 %v4219_v39, %s2769_s14 }
 0x3d4   : > { %2240 = vrot.lane.b32.xlu2 %v4222_v16, %s2769_s14 }
 0x3d5   : > { %2238 = vrot.lane.b32.xlu1 %v4213_v28, %s2769_s14  ;;  %s2521_s14 = sshll.u32 %s2835_s28, 8  ;;  %s2383_s28 = sshll.u32 %s3798_s29, 4  ;;  %s2384_s28 = int_to_ptr.vmem [resolvable:$true] %s2383_s28 }
 0x3d6   : > { %s2382_s13 = scalar_lea.hbm %s4456_s7, %s2521_s14 }
 0x3d7   : > { %s2385_s16 = sshll.u32 %s2382_s13, 4  ;;  %s2386_s16 = int_to_ptr.hbm [resolvable:$true] %s2385_s16 }
 0x3d8   : > { %s2701_s12 = sshra.s32 %s2386_s16, 4  ;;  %s2702_s12 = int_to_ptr.hbm [resolvable:$true] %s2701_s12 }
 0x3d9   : > { %s2703_s17 = scalar_lea.hbm %s2702_s12, 256  ;;  %p2708_p9 = scmp.lt.s32.totalorder %s2702_s12, %s4456_s7 }
 0x3da   : > { %p2704_p1 = scmp.ne.s32.totalorder %s2702_s12, %s2703_s17  ;;  %p2709_p10 = scmp.lt.s32.totalorder %s2707_s23, %s2703_s17 }
 0x3dc   : > { %p2705_p4 = pnand %p2704_p1, %p2881_p7  ;;  %p2710_p2 = por %p2709_p10, %p2708_p9 }
 0x3de   : > { %p2706_p8 = pneg %p2705_p4 }
 0x3e0   : > { %p2711_p11 = pnand %p2710_p2, %p2706_p8 }
 0x3e9   : > { %v2195_v15 = vpop.permute.xlu2 %2194 }
 0x3f1   : > { %v2235_v40 = vpop.permute.xlu2 %2234 }
 0x400   : > { %v2227_v21 = vpop.permute.xlu1 %2226  ;;  %v2203_v26 = vpop.permute.xlu0 %2202 }
 0x401   : > { %v2242_v61 = vsel %vm1655_vm2, %v2227_v21, %v2235_v40  ;;  %v2246_v33 = vsel %vm1655_vm2, %v2235_v40, %v2227_v21  ;;  %v2210_v52 = vsel %vm1617_vm1, %v2195_v15, %v2203_v26  ;;  %v2214_v35 = vsel %vm1617_vm1, %v2203_v26, %v2195_v15 }
 0x402   : > { %v2250_v45 = vadd.f32 %v2242_v61, %v4502_v11  ;;  %v2251_v25 = vadd.f32 %v2246_v33, %v4503_v17  ;;  %v2218_v30 = vadd.f32 %v2214_v35, %v4504_v53  ;;  %v2219_v38 = vadd.f32 %v2210_v52, %v4505_v58 }
 0x404   : > { %v2258_v59 = vmax.f32 %v2218_v30, %v2250_v45  ;;  %v2259_v51 = vmax.f32 %v2219_v38, %v2251_v25 }
 0x406   : > { %v4261_v9 = vmax.f32 %v4132_v27, %v2258_v59  ;;  %v4264_v54 = vmax.f32 %v4129_v37, %v2259_v51  ;;  %v2229_v31 = vpop.permute.xlu2 %2228 }
 0x408   : > { %2306 = vrot.lane.b32.xlu2 %v4261_v9, %s2771_s20  ;;  %2274 = vrot.lane.b32.xlu0 %v4261_v9, %s2772_s5 }
 0x409   : > { %2282 = vrot.lane.b32.xlu1 %v4264_v54, %s2772_s5 }
 0x410   : > { %2314 = vrot.lane.b32.xlu0 %v4264_v54, %s2771_s20 }
 0x41e   : > { %v2197_v42 = vpop.permute.xlu0 %2196  ;;  %v2207_v50 = vpop.permute.xlu2 %2206 }
 0x41f   : > { %v2205_v62 = vpop.permute.xlu1 %2204 }
 0x420   : > { %v2211_v27 = vsel %vm1617_vm1, %v2197_v42, %v2205_v62  ;;  %v2215_v37 = vsel %vm1617_vm1, %v2205_v62, %v2197_v42 }
 0x421   : > { %v2220_v12 = vadd.f32 %v2215_v37, %v4504_v53  ;;  %v2221_v48 = vadd.f32 %v2211_v27, %v4505_v58 }
 0x426   : > { %v2237_v57 = vpop.permute.xlu0 %2236  ;;  %v2201_v14 = vpop.permute.xlu2 %2200 }
 0x427   : > { %v2243_v10 = vsel %vm1655_vm2, %v2229_v31, %v2237_v57  ;;  %v2247_v18 = vsel %vm1655_vm2, %v2237_v57, %v2229_v31 }
 0x428   : > { %v2252_v43 = vadd.f32 %v2243_v10, %v4502_v11  ;;  %v2253_v0 = vadd.f32 %v2247_v18, %v4503_v17 }
 0x42a   : > { %v2260_v2 = vmax.f32 %v2220_v12, %v2252_v43  ;;  %v2261_v19 = vmax.f32 %v2221_v48, %v2253_v0 }
 0x42c   : > { %v4287_v41 = vmax.f32 %v4166_v44, %v2261_v19  ;;  %v4290_v4 = vmax.f32 %v4163_v3, %v2260_v2 }
 0x42e   : > { %2284 = vrot.lane.b32.xlu2 %v4287_v41, %s2772_s5  ;;  %2308 = vrot.lane.b32.xlu0 %v4290_v4, %s2771_s20  ;;  %v2241_v21 = vpop.permute.xlu2 %2240 }
 0x42f   : > { %2276 = vrot.lane.b32.xlu1 %v4290_v4, %s2772_s5 }
 0x436   : > { %v2231_v20 = vpop.permute.xlu0 %2230 }
 0x437   : > { %v2199_v22 = vpop.permute.xlu1 %2198 }
 0x438   : > { %v2212_v44 = vsel %vm1617_vm1, %v2199_v22, %v2207_v50  ;;  %v2216_v3 = vsel %vm1617_vm1, %v2207_v50, %v2199_v22 }
 0x439   : > { %v2222_v1 = vadd.f32 %v2216_v3, %v4504_v53  ;;  %v2223_v47 = vadd.f32 %v2212_v44, %v4505_v58 }
 0x43e   : > { %v2209_v49 = vpop.permute.xlu0 %2208 }
 0x43f   : > { %v2233_v6 = vpop.permute.xlu1 %2232  ;;  %v2213_v26 = vsel %vm1617_vm1, %v2201_v14, %v2209_v49  ;;  %v2217_v61 = vsel %vm1617_vm1, %v2209_v49, %v2201_v14 }
 0x440   : > { %v2245_v35 = vsel %vm1655_vm2, %v2233_v6, %v2241_v21  ;;  %v2249_v45 = vsel %vm1655_vm2, %v2241_v21, %v2233_v6  ;;  %v2224_v38 = vadd.f32 %v2217_v61, %v4504_v53  ;;  %v2225_v59 = vadd.f32 %v2213_v26, %v4505_v58 }
 0x441   : > { %v2256_v51 = vadd.f32 %v2245_v35, %v4502_v11  ;;  %v2257_v42 = vadd.f32 %v2249_v45, %v4503_v17 }
 0x443   : > { %v2264_v37 = vmax.f32 %v2224_v38, %v2256_v51  ;;  %v2265_v31 = vmax.f32 %v2225_v59, %v2257_v42 }
 0x445   : > { %v4328_v53 = vmax.f32 %v4219_v39, %v2264_v37  ;;  %v4331_v58 = vmax.f32 %v4222_v16, %v2265_v31 }
 0x447   : > { %v2239_v63 = vpop.permute.xlu1 %2238 }
 0x448   : > { %v2244_v15 = vsel %vm1655_vm2, %v2231_v20, %v2239_v63  ;;  %v2248_v40 = vsel %vm1655_vm2, %v2239_v63, %v2231_v20 }
 0x449   : > { %v2254_v33 = vadd.f32 %v2244_v15, %v4502_v11  ;;  %v2255_v52 = vadd.f32 %v2248_v40, %v4503_v17 }
 0x44b   : > { %v2262_v25 = vmax.f32 %v2222_v1, %v2254_v33  ;;  %v2263_v30 = vmax.f32 %v2223_v47, %v2255_v52 }
 0x44d   : > { %v2271_v62 = vmax.f32 %v4213_v28, %v2263_v30  ;;  %v2270_v27 = vmax.f32 %v4216_v5, %v2262_v25 }
 0x44f   : > { %2286 = vrot.lane.b32.xlu0 %v2271_v62, %s2772_s5  ;;  %2310 = vrot.lane.b32.xlu1 %v2270_v27, %s2771_s20 }
 0x450   : > { %2278 = vrot.lane.b32.xlu2 %v2270_v27, %s2772_s5 }
 0x457   : > { %2280 = vrot.lane.b32.xlu0 %v4328_v53, %s2772_s5  ;;  %2288 = vrot.lane.b32.xlu1 %v4331_v58, %s2772_s5 }
 0x458   : > { %2312 = vrot.lane.b32.xlu2 %v4328_v53, %s2771_s20 }
 0x45f   : > { %2320 = vrot.lane.b32.xlu0 %v4331_v58, %s2771_s20  ;;  %2316 = vrot.lane.b32.xlu1 %v4287_v41, %s2771_s20 }
 0x460   : > { %2318 = vrot.lane.b32.xlu2 %v2271_v62, %s2771_s20 }
 0x462   : > { %v2307_v11 = vpop.permute.xlu2 %2306 }
 0x47a   : > { %v2275_v28 = vpop.permute.xlu0 %2274 }
 0x47b   : > { %v2283_v5 = vpop.permute.xlu1 %2282 }
 0x47c   : > { %v2290_v39 = vsel %vm1709_vm3, %v2275_v28, %v2283_v5  ;;  %v2294_v16 = vsel %vm1709_vm3, %v2283_v5, %v2275_v28 }
 0x47d   : > { %v2298_v18 = vadd.f32 %v2294_v16, %v3734_v24  ;;  %v2299_v12 = vadd.f32 %v2290_v39, %v3736_v46 }
 0x482   : > { %v2315_v17 = vpop.permute.xlu0 %2314 }
 0x483   : > { %v2322_v57 = vsel %vm1747_vm4, %v2307_v11, %v2315_v17  ;;  %v2326_v10 = vsel %vm1747_vm4, %v2315_v17, %v2307_v11 }
 0x484   : > { %v2330_v48 = vadd.f32 %v2322_v57, %v3738_v55  ;;  %v2331_v43 = vadd.f32 %v2326_v10, %v3740_v60 }
 0x486   : > { %v2338_v0 = vmax.f32 %v2298_v18, %v2330_v48  ;;  %v2339_v2 = vmax.f32 %v2299_v12, %v2331_v43 }
 0x488   : > { %v2346_v19 = vmax.f32 %v4261_v9, %v2338_v0  ;;  %v2347_v50 = vmax.f32 %v4264_v54, %v2339_v2  ;;  %v2285_v14 = vpop.permute.xlu2 %2284 }
 0x48a   : > { %v2354_v22 = vadd.f32 %v2346_v19, %v3786_v23  ;;  %v2355_v20 = vadd.f32 %v2347_v50, %v3790_v56 }
 0x48c   : > { %2362 = vst [vmem:[%s3798_s29 + $0x30] sm:$0xff] %v2354_v22 }
 0x48d   : > { %2363 = vst [vmem:[%s3798_s29 + $0x38] sm:$0xff] %v2355_v20 }
 0x4a0   : > { %v2309_v49 = vpop.permute.xlu0 %2308 }
 0x4a1   : > { %v2277_v3 = vpop.permute.xlu1 %2276 }
 0x4a2   : > { %v2291_v59 = vsel %vm1709_vm3, %v2277_v3, %v2285_v14  ;;  %v2295_v51 = vsel %vm1709_vm3, %v2285_v14, %v2277_v3 }
 0x4aa   : > { %v2279_v6 = vpop.permute.xlu2 %2278 }
 0x4b2   : > { %v2313_v44 = vpop.permute.xlu2 %2312 }
 0x4ba   : > { %v2319_v63 = vpop.permute.xlu2 %2318 }
 0x4c1   : > { %v2311_v1 = vpop.permute.xlu1 %2310  ;;  %v2287_v47 = vpop.permute.xlu0 %2286 }
 0x4c2   : > { %v2324_v15 = vsel %vm1747_vm4, %v2311_v1, %v2319_v63  ;;  %v2328_v9 = vsel %vm1747_vm4, %v2319_v63, %v2311_v1  ;;  %v2292_v23 = vsel %vm1709_vm3, %v2279_v6, %v2287_v47  ;;  %v2296_v56 = vsel %vm1709_vm3, %v2287_v47, %v2279_v6 }
 0x4c3   : > { %v2334_v54 = vadd.f32 %v2324_v15, %v3738_v55  ;;  %v2335_v40 = vadd.f32 %v2328_v9, %v3740_v60  ;;  %v2302_v21 = vadd.f32 %v2296_v56, %v3734_v24  ;;  %v2303_v26 = vadd.f32 %v2292_v23, %v3736_v46 }
 0x4c5   : > { %v2342_v61 = vmax.f32 %v2302_v21, %v2334_v54  ;;  %v2343_v33 = vmax.f32 %v2303_v26, %v2335_v40 }
 0x4c7   : > { %v2350_v52 = vmax.f32 %v2270_v27, %v2342_v61  ;;  %v2351_v35 = vmax.f32 %v2271_v62, %v2343_v33 }
 0x4c9   : > { %v2358_v45 = vadd.f32 %v2350_v52, %v3874_v8  ;;  %v2359_v25 = vadd.f32 %v2351_v35, %v3878_v13  ;;  %v2289_v30 = vpop.permute.xlu1 %2288  ;;  %v2281_v38 = vpop.permute.xlu0 %2280  ;;  %v2300_v8 = vadd.f32 %v2295_v51, %v3734_v24  ;;  %v2301_v13 = vadd.f32 %v2291_v59, %v3736_v46 }
 0x4ca   : > { %v2293_v42 = vsel %vm1709_vm3, %v2281_v38, %v2289_v30  ;;  %v2297_v62 = vsel %vm1709_vm3, %v2289_v30, %v2281_v38 }
 0x4cb   : > { %2366 = vst [vmem:[%s3798_s29 + $0xb0] sm:$0xff] %v2358_v45  ;;  %v2304_v27 = vadd.f32 %v2297_v62, %v3734_v24  ;;  %v2305_v37 = vadd.f32 %v2293_v42, %v3736_v46 }
 0x4cc   : > { %2367 = vst [vmem:[%s3798_s29 + $0xb8] sm:$0xff] %v2359_v25 }
 0x4d1   : > { %v2317_v31 = vpop.permute.xlu1 %2316  ;;  %v2321_v28 = vpop.permute.xlu0 %2320 }
 0x4d2   : > { %v2323_v5 = vsel %vm1747_vm4, %v2309_v49, %v2317_v31  ;;  %v2327_v39 = vsel %vm1747_vm4, %v2317_v31, %v2309_v49  ;;  %v2325_v16 = vsel %vm1747_vm4, %v2313_v44, %v2321_v28  ;;  %v2329_v11 = vsel %vm1747_vm4, %v2321_v28, %v2313_v44 }
 0x4d3   : > { %v2332_v17 = vadd.f32 %v2323_v5, %v3738_v55  ;;  %v2333_v24 = vadd.f32 %v2327_v39, %v3740_v60  ;;  %v2336_v46 = vadd.f32 %v2325_v16, %v3738_v55  ;;  %v2337_v57 = vadd.f32 %v2329_v11, %v3740_v60 }
 0x4d5   : > { %v2340_v10 = vmax.f32 %v2300_v8, %v2332_v17  ;;  %v2341_v18 = vmax.f32 %v2301_v13, %v2333_v24  ;;  %v2344_v12 = vmax.f32 %v2304_v27, %v2336_v46  ;;  %v2345_v48 = vmax.f32 %v2305_v37, %v2337_v57 }
 0x4d7   : > { %v2348_v36 = vmax.f32 %v4290_v4, %v2340_v10  ;;  %v2349_v55 = vmax.f32 %v4287_v41, %v2341_v18  ;;  %v2352_v60 = vmax.f32 %v4328_v53, %v2344_v12  ;;  %v2353_v43 = vmax.f32 %v4331_v58, %v2345_v48 }
 0x4d9   : > { %v2356_v0 = vadd.f32 %v2348_v36, %v3832_v7  ;;  %v2357_v2 = vadd.f32 %v2349_v55, %v3836_v34  ;;  %v2360_v19 = vadd.f32 %v2352_v60, %v3944_v32  ;;  %v2361_v50 = vadd.f32 %v2353_v43, %v3948_v29 }
 0x4db   : > { %2364 = vst [vmem:[%s3798_s29 + $0x70] sm:$0xff] %v2356_v0 }
 0x4dc   : > { %2365 = vst [vmem:[%s3798_s29 + $0x78] sm:$0xff] %v2357_v2 }
 0x4dd   : > { %2368 = vst [vmem:[%s3798_s29 + $0xf0] sm:$0xff] %v2360_v19 }
 0x4de   : > { %2369 = vst [vmem:[%s3798_s29 + $0xf8] sm:$0xff] %v2361_v50 }
 0x4df   : > { %2714 = shalt.err (!%p2711_p11)
}
 0x4e0   : > { %s2773_s8 = smov 256  }
 0x4e1   : > { %2530 = dma.vmem_to_hbm [thread:$0]  (%p2881_p7), %s2384_s28, 4096, %s2386_s16, %s2371_s1, %s2773_s8, %s2773_s8, %s2772_s5  }
 0x4e2 PF: > { %s2400_s26 = sand.u32 1, %s2749_s24   ;;  %p4507_p12 = scmp.ge.s32.totalorder %s2761_s27, 2 }
 0x4e3   : > { %s2401_s10 = scalar_lea.sflag [#allocation4], %s2400_s26 }
 0x4e4   : > { %p2544_p13 = pnand %p4507_p12, %p2849_p6 }
 0x4e6   : > { %p2545_p0 = pneg %p2544_p13 }
 0x4e8   : > { %2744 = dma.done.wait (%p2545_p0), %s2401_s10, 4096  }
 0x4e9   : > { %2746 = vsyncadd (%p2545_p0), %s2401_s10, 4294963200  ;;  %s4508_s27 = sld [smem:[#allocation15_spill]]  ;;  %s4511_s24 = smov %s2753_s25 }
 0x4ea   : > { %s4509_s18 = sld [smem:[#allocation13_spill]] }
 0x4eb   : > { %s4510_s26 = sld [smem:[#allocation16_spill]] }
 0x4ef   : > { %p23_p3 = scmp.ge.s32.totalorder %s4508_s27, 4  }
 0x4f0   : > { %s4512_s25 = smov %s4509_s18 }
 0x4f1   :  { %25 = sbr.rel (!%p23_p3) target bundleno = 10 (0xa), region = 118 }
 0x4f6   :  { %2407 = vsyncpa [#allocation3], 1 }
 0x4f7   :  { %2409 = vsyncpa [#allocation3 + $0x1], 1 }
 0x4f8   :  { %2410 = vsyncpa [#allocation6], 1 }
 0x4f9   :  { %2412 = vsyncpa [#allocation6 + $0x1], 1 }
 0x4fa   :  { %2413 = vsyncpa [#allocation4], 1 }
 0x4fb   :  { %2415 = vsyncpa [#allocation4 + $0x1], 1 }

</bundles_post_ra>
